<compile_context>
chip_gen: v7x
topology: tpu7x:2x2x1
jax: 0.10.0
libtpu: 0.0.40
codegen_flags: <defaults>
</compile_context>

<pallas_src>
import functools

import numpy as np
import jax
import jax.numpy as jnp
from jax.experimental import pallas as pl
from jax.experimental.pallas import tpu as pltpu


def lspm_kernel(x_ref, wconv_t_ref, wgap_t_ref, pool_ref, o_ref,
                lt_ref, acc_ref, *, block_h, hw_valid, compute_dtype):
    """Grid = (batch, h_blocks). x_ref/o_ref are (C, HW_pad); scratch persists across h."""
    h = pl.program_id(1)
    nh = pl.num_programs(1)
    hw_pad = x_ref.shape[-1]
    cd = jnp.dtype(compute_dtype)
    exact_recip = cd == jnp.dtype(jnp.float32)

    # ---- per-batch setup (h == 0): L^T = (G @ Xc)^T = Xc^T @ G^T  -> (HW, C) ----
    @pl.when(h == 0)
    def _setup():
        x = x_ref[...]                                     # (C, HW) compute_dtype
        # Xc^T = X^T @ Wconv^T  (contract over channels: dim0 x dim0).
        xc_t = jax.lax.dot_general(
            x, wconv_t_ref[...], dimension_numbers=(((0,), (0,)), ((), ())),
            preferred_element_type=jnp.float32)            # (HW, S2) f32
        # Adaptive average pool as X @ P, then G^T = gap^T @ Wgap^T, ReLU.
        gap = jnp.dot(x, pool_ref[...],
                      preferred_element_type=jnp.float32)  # (C, S2) f32
        g_t = jnp.maximum(
            jax.lax.dot_general(gap.astype(cd), wgap_t_ref[...],
                                dimension_numbers=(((0,), (0,)), ((), ())),
                                preferred_element_type=jnp.float32),
            0.0)                                           # (S2, C) f32
        lt_ref[...] = jnp.dot(xc_t.astype(cd), g_t.astype(cd),
                              preferred_element_type=jnp.float32).astype(cd)  # (HW, C)
        # Fold the residual into the accumulator right away (no extra add at finalize).
        acc_ref[...] = x.astype(jnp.float32)

    # ---- one row-block of the softmax + output accumulation ----
    start = pl.multiple_of(h * block_h, block_h)
    xb = x_ref[:, pl.ds(start, block_h)]                   # (C, BH)  compute_dtype
    x_all = x_ref[...]                                     # (C, HW)  compute_dtype

    # Scores for this row-block over ALL HW columns (softmax axis is complete).
    s = jax.lax.dot_general(
        xb, x_all, dimension_numbers=(((0,), (0,)), ((), ())),
        preferred_element_type=jnp.float32)                # (BH, HW), f32
    if hw_valid != hw_pad:                                 # static: only for ragged HW
        cols = jax.lax.broadcasted_iota(jnp.int32, s.shape, 1)
        s = jnp.where(cols < hw_valid, s, jnp.float32(-1e30))
    m = jnp.max(s, axis=-1, keepdims=True)                 # (BH, 1)
    e = jnp.exp(s - m)                                     # f32, unnormalized probs
    denom = jnp.sum(e, axis=-1, keepdims=True)             # (BH, 1)
    if exact_recip:
        r = 1.0 / denom
    else:
        r = pl.reciprocal(denom, approx=True)              # EUP, free slot

    # Fold 1/rowsum into the small (BH, C) slice of L^T, not the (BH, HW) exp block.
    lbt = lt_ref[pl.ds(start, block_h), :]                 # (BH, C) compute_dtype
    lbt_scaled = (lbt.astype(jnp.float32) * r).astype(cd)  # (BH, C)

    # acc += L_blk_scaled^T @ E_blk   (contract block rows: dim0 x dim0) -> (C, HW)
    acc_ref[...] += jax.lax.dot_general(
        lbt_scaled, e.astype(cd),
        dimension_numbers=(((0,), (0,)), ((), ())),
        preferred_element_type=jnp.float32)

    # ---- finalize on the last h block: cast + single HBM writeback ----
    @pl.when(h == nh - 1)
    def _finalize():
        o_ref[...] = acc_ref[...].astype(o_ref.dtype)


def _round_up(v, m):
    return ((v + m - 1) // m) * m


def _vmem_budget():
    """(usable VMEM bytes, max block_h) sized per TPU generation."""
    phys = 64 << 20  # conservative default (v7x-class) if the query is unavailable
    try:
        info = pltpu.get_tpu_info()
        phys = int(getattr(info, "vmem_capacity_bytes", phys))
    except Exception:
        pass
    if phys <= (64 << 20) + (1 << 20):
        # v7x-class: 64 MiB physical per core; leave headroom for Mosaic scratch/DMA.
        return min(phys, 64 << 20) - (12 << 20), 512
    # v5e/v6e: 128 MiB physical.
    return min(phys, 128 << 20) - (24 << 20), 2048


def _need_bytes(block_h, C, HW, S2, cd_size, out_size):
    """Conservative VMEM estimate: Pallas double-buffers each BlockSpec; softmax temps."""
    x_bytes = 2 * C * HW * cd_size                 # X block (double buffered)
    o_bytes = 2 * C * HW * out_size                # output block (double buffered)
    w_bytes = 2 * (C * S2 + C * C + HW * S2) * cd_size
    scratch = C * HW * 4 + HW * C * cd_size        # f32 acc + compute_dtype L^T
    work = 3 * block_h * HW * 4 + block_h * HW * cd_size   # s, e, (s-m), bf16 e copy
    return x_bytes + o_bytes + w_bytes + scratch + work + (4 << 20)


def _pick_block_h(HW_pad, C, S2, cd_size, out_size, budget, max_block):
    """Largest multiple-of-128 divisor of HW_pad that fits the VMEM budget."""
    hi = min(max_block, HW_pad)
    hi -= hi % 128
    for bh in range(hi, 127, -128):
        if HW_pad % bh != 0:
            continue
        if _need_bytes(bh, C, HW_pad, S2, cd_size, out_size) <= budget:
            return bh
    return 128


def build_pool_matrix(H, W, S):
    """Averaging matrix P (HW, S*S) reproducing nn.AdaptiveAvgPool2d(S)."""
    P = np.zeros((H * W, S * S), dtype=np.float32)
    for si in range(S):
        h0 = (si * H) // S
        h1 = -((-(si + 1) * H) // S)   # ceil((si+1)*H/S)
        for sj in range(S):
            w0 = (sj * W) // S
            w1 = -((-(sj + 1) * W) // S)
            area = float((h1 - h0) * (w1 - w0))
            for hh in range(h0, h1):
                for ww in range(w0, w1):
                    P[hh * W + ww, si * S + sj] = 1.0 / area
    return jnp.asarray(P)


def lspm_forward(x, wconv, wgap, pool, S, *, block_h=None,
                 compute_dtype=jnp.bfloat16):
    B, C, H, W = x.shape
    HW = H * W
    S2 = S * S
    HW_pad = _round_up(HW, 128)
    cd = jnp.dtype(compute_dtype)
    out_size = jnp.dtype(x.dtype).itemsize

    # Cast-hoist: everything the kernel touches is already in compute_dtype.
    xr = x.reshape(B, C, HW).astype(cd)
    pool_cd = pool.astype(cd)
    if HW_pad != HW:
        xr = jnp.pad(xr, ((0, 0), (0, 0), (0, HW_pad - HW)))
        pool_cd = jnp.pad(pool_cd, ((0, HW_pad - HW), (0, 0)))
    wconv_t = jnp.transpose(wconv).astype(cd)   # (C, S2) -- transposed on host
    wgap_t = jnp.transpose(wgap).astype(cd)     # (C, C)

    budget, max_block = _vmem_budget()
    if block_h is None:
        block_h = _pick_block_h(HW_pad, C, S2, cd.itemsize, out_size, budget, max_block)
    assert HW_pad % block_h == 0, (HW_pad, block_h)
    nh = HW_pad // block_h

    need = _need_bytes(block_h, C, HW_pad, S2, cd.itemsize, out_size)
    vmem_limit = int(min(max(need, 32 << 20), budget))

    kernel = functools.partial(lspm_kernel, block_h=block_h, hw_valid=HW,
                               compute_dtype=cd)

    # TODO(synk): for B == 1 on v7x, add a parallel output-column-tile grid axis so both
    # TensorCores are fed; with B >= 2 the "parallel" batch axis already covers megacore.
    out = pl.pallas_call(
        kernel,
        out_shape=jax.ShapeDtypeStruct((B, C, HW_pad), x.dtype),
        grid_spec=pltpu.PrefetchScalarGridSpec(
            num_scalar_prefetch=0,
            grid=(B, nh),
            in_specs=[
                pl.BlockSpec((None, C, HW_pad), lambda b, h: (b, 0, 0)),  # X, resident over h
                pl.BlockSpec((C, S2), lambda b, h: (0, 0)),               # Wconv^T
                pl.BlockSpec((C, C), lambda b, h: (0, 0)),                # Wgap^T
                pl.BlockSpec((HW_pad, S2), lambda b, h: (0, 0)),          # pooling matrix P
            ],
            out_specs=pl.BlockSpec((None, C, HW_pad), lambda b, h: (b, 0, 0)),
            scratch_shapes=[
                pltpu.VMEM((HW_pad, C), cd),        # L^T, computed once per batch element
                pltpu.VMEM((C, HW_pad), jnp.float32),  # f32 output accumulator (+ residual)
            ],
        ),
        compiler_params=pltpu.CompilerParams(
            dimension_semantics=("parallel", "arbitrary"),
            vmem_limit_bytes=vmem_limit),
    )(xr, wconv_t, wgap_t, pool_cd)

    if HW_pad != HW:
        out = out[..., :HW]
    return out.reshape(B, C, H, W)


def lspm_reference(x, wconv, wgap, pool):
    """Pure-JAX f32 reference matching the PyTorch forward."""
    B, C, H, W = x.shape
    xr = x.reshape(B, C, H * W).astype(jnp.float32)
    mm1 = jnp.einsum('bch,bck->bhk', xr, xr)
    mm1 = jax.nn.softmax(mm1, axis=-1)
    xc = jnp.einsum('oc,bch->boh', wconv, xr)
    mm2 = jnp.einsum('boh,bhk->bok', xc, mm1)
    gap = jnp.einsum('bch,hs->bcs', xr, pool)
    gap = jnp.maximum(jnp.einsum('dc,bcs->bds', wgap, gap), 0.0)
    mm3 = jnp.einsum('bcs,bsh->bch', gap, mm2)
    return (mm3 + xr).reshape(B, C, H, W).astype(x.dtype)


if __name__ == "__main__":
    B, C, H, W, S = 2, 4, 16, 16, 2

    key = jax.random.PRNGKey(0)
    kx, kc, kg = jax.random.split(key, 3)
    x = jax.random.normal(kx, (B, C, H, W), dtype=jnp.float32)
    # 1x1 conv weights, no bias (matching the PyTorch module's parameters).
    wconv = 0.1 * jax.random.normal(kc, (S * S, C), dtype=jnp.float32)  # conv:    C -> S*S
    wgap = 0.1 * jax.random.normal(kg, (C, C), dtype=jnp.float32)       # GAP_1X1: C -> C
    pool = build_pool_matrix(H, W, S)

    ref = lspm_reference(x, wconv, wgap, pool)

    # f32-MXU path (structural check: 2-step h accumulation, exact reciprocal): tight tol.
    out_f32 = jax.block_until_ready(
        lspm_forward(x, wconv, wgap, pool, S, block_h=128,
                     compute_dtype=jnp.float32))
    np.testing.assert_allclose(np.asarray(out_f32), np.asarray(ref),
                               rtol=1e-4, atol=1e-4)

    # Default bf16-MXU path (f32 softmax math + f32 accumulation): loosened tolerance.
    out_bf16 = jax.block_until_ready(
        lspm_forward(x, wconv, wgap, pool, S))
    np.testing.assert_allclose(np.asarray(out_bf16), np.asarray(ref),
                               rtol=2e-2, atol=2e-2)

    # Ragged spatial dims: HW = 120 -> padded to 128 with masked softmax columns.
    H2, W2 = 12, 10
    x2 = jax.random.normal(kx, (B, C, H2, W2), dtype=jnp.float32)
    pool2 = build_pool_matrix(H2, W2, S)
    ref2 = lspm_reference(x2, wconv, wgap, pool2)
    out2 = jax.block_until_ready(
        lspm_forward(x2, wconv, wgap, pool2, S, compute_dtype=jnp.float32))
    np.testing.assert_allclose(np.asarray(out2), np.asarray(ref2),
                               rtol=1e-4, atol=1e-4)

    print("KERNEL_OK")
</pallas_src>

<mosaic_0001>
module attributes {stable_mosaic.version = 11 : i64} {
  func.func @lspm_kernel(%arg0: i32, %arg1: i32, %arg2: memref<1x4x256xf32, #tpu.memory_space<vmem>>, %arg3: memref<4x4xf32, #tpu.memory_space<vmem>>, %arg4: memref<4x4xf32, #tpu.memory_space<vmem>>, %arg5: memref<256x4xf32, #tpu.memory_space<vmem>>, %arg6: memref<1x4x256xf32, #tpu.memory_space<vmem>>, %arg7: memref<256x4xf32, #tpu.memory_space<vmem>>, %arg8: memref<4x256xf32, #tpu.memory_space<vmem>>) attributes {dimension_semantics = [#tpu.dimension_semantics<parallel>, #tpu.dimension_semantics<arbitrary>], iteration_bounds = array<i64: 2, 2>, scalar_prefetch = 0 : i64, scratch_operands = 2 : i64, tpu.core_type = #tpu.core_type<tc>, window_params = [{transform_indices = @transform_0, window_bounds = array<i64: 1, 4, 256>}, {pipeline_mode = #tpu.pipeline_mode<synchronous>, transform_indices = @transform_1, window_bounds = array<i64: 4, 4>}, {pipeline_mode = #tpu.pipeline_mode<synchronous>, transform_indices = @transform_2, window_bounds = array<i64: 4, 4>}, {pipeline_mode = #tpu.pipeline_mode<synchronous>, transform_indices = @transform_3, window_bounds = array<i64: 256, 4>}, {transform_indices = @transform_4, window_bounds = array<i64: 1, 4, 256>}]} {
    %c0_i32 = arith.constant 0 : i32
    %0 = arith.cmpi eq, %arg1, %c0_i32 : i32
    %1 = arith.extui %0 : i1 to i32
    %c0_i32_0 = arith.constant 0 : i32
    %2 = arith.cmpi ne, %1, %c0_i32_0 : i32
    scf.if %2 {
      %c0_15 = arith.constant 0 : index
      %c0_16 = arith.constant 0 : index
      %c0_17 = arith.constant 0 : index
      %31 = vector.load %arg2[%c0_15, %c0_16, %c0_17] : memref<1x4x256xf32, #tpu.memory_space<vmem>>, vector<1x4x256xf32>
      %32 = vector.shape_cast %31 : vector<1x4x256xf32> to vector<4x256xf32>
      %c0_18 = arith.constant 0 : index
      %c0_19 = arith.constant 0 : index
      %33 = vector.load %arg3[%c0_18, %c0_19] : memref<4x4xf32, #tpu.memory_space<vmem>>, vector<4x4xf32>
      %cst_20 = arith.constant dense<0.000000e+00> : vector<256x4xf32>
      %34 = tpu.matmul %32, %33, %cst_20 {dimension_numbers = #tpu.dot_dimension_numbers<[0], [0], [1], [1], [0, 1, 1, 1], [], []>} : vector<4x256xf32>, vector<4x4xf32>, vector<256x4xf32> -> vector<256x4xf32>
      %c0_21 = arith.constant 0 : index
      %c0_22 = arith.constant 0 : index
      %35 = vector.load %arg5[%c0_21, %c0_22] : memref<256x4xf32, #tpu.memory_space<vmem>>, vector<256x4xf32>
      %cst_23 = arith.constant dense<0.000000e+00> : vector<4x4xf32>
      %36 = tpu.matmul %32, %35, %cst_23 {dimension_numbers = #tpu.dot_dimension_numbers<[1], [0], [0], [1], [0, 0, 1, 1], [], []>} : vector<4x256xf32>, vector<256x4xf32>, vector<4x4xf32> -> vector<4x4xf32>
      %c0_24 = arith.constant 0 : index
      %c0_25 = arith.constant 0 : index
      %37 = vector.load %arg4[%c0_24, %c0_25] : memref<4x4xf32, #tpu.memory_space<vmem>>, vector<4x4xf32>
      %cst_26 = arith.constant dense<0.000000e+00> : vector<4x4xf32>
      %38 = tpu.matmul %36, %37, %cst_26 {dimension_numbers = #tpu.dot_dimension_numbers<[0], [0], [1], [1], [0, 1, 1, 1], [], []>} : vector<4x4xf32>, vector<4x4xf32>, vector<4x4xf32> -> vector<4x4xf32>
      %cst_27 = arith.constant 0.000000e+00 : f32
      %39 = vector.broadcast %cst_27 : f32 to vector<4x4xf32>
      %40 = arith.maximumf %38, %39 : vector<4x4xf32>
      %cst_28 = arith.constant dense<0.000000e+00> : vector<256x4xf32>
      %41 = tpu.matmul %34, %40, %cst_28 {dimension_numbers = #tpu.dot_dimension_numbers<[1], [0], [0], [1], [0, 0, 1, 1], [], []>} : vector<256x4xf32>, vector<4x4xf32>, vector<256x4xf32> -> vector<256x4xf32>
      %c0_29 = arith.constant 0 : index
      %c0_30 = arith.constant 0 : index
      %42 = vector.load %arg7[%c0_29, %c0_30] : memref<256x4xf32, #tpu.memory_space<vmem>>, vector<256x4xf32>
      tpu.vector_store %arg7[%c0_29, %c0_30], %41 {strides = array<i32>} : memref<256x4xf32, #tpu.memory_space<vmem>>, vector<256x4xf32>,
      %c0_31 = arith.constant 0 : index
      %c0_32 = arith.constant 0 : index
      %43 = vector.load %arg8[%c0_31, %c0_32] : memref<4x256xf32, #tpu.memory_space<vmem>>, vector<4x256xf32>
      tpu.vector_store %arg8[%c0_31, %c0_32], %32 {strides = array<i32>} : memref<4x256xf32, #tpu.memory_space<vmem>>, vector<4x256xf32>,
    } else {
    }
    %c128_i32 = arith.constant 128 : i32
    %3 = arith.muli %arg1, %c128_i32 : i32
    %4 = tpu.assume_multiple %3, 128 : i32
    %c0 = arith.constant 0 : index
    %c0_1 = arith.constant 0 : index
    %5 = arith.index_cast %4 : i32 to index
    %6 = vector.load %arg2[%c0, %c0_1, %5] : memref<1x4x256xf32, #tpu.memory_space<vmem>>, vector<1x4x128xf32>
    %7 = vector.shape_cast %6 : vector<1x4x128xf32> to vector<4x128xf32>
    %c0_2 = arith.constant 0 : index
    %c0_3 = arith.constant 0 : index
    %c0_4 = arith.constant 0 : index
    %8 = vector.load %arg2[%c0_2, %c0_3, %c0_4] : memref<1x4x256xf32, #tpu.memory_space<vmem>>, vector<1x4x256xf32>
    %9 = vector.shape_cast %8 : vector<1x4x256xf32> to vector<4x256xf32>
    %cst = arith.constant dense<0.000000e+00> : vector<128x256xf32>
    %10 = tpu.matmul %7, %9, %cst {dimension_numbers = #tpu.dot_dimension_numbers<[0], [0], [1], [1], [0, 1, 1, 1], [], []>} : vector<4x128xf32>, vector<4x256xf32>, vector<128x256xf32> -> vector<128x256xf32>
    %cst_5 = arith.constant dense<0xFF800000> : vector<128xf32>
    %11 = vector.multi_reduction <maximumf>, %10, %cst_5 [1] : vector<128x256xf32> to vector<128xf32>
    %12 = vector.shape_cast %11 : vector<128xf32> to vector<128x1xf32>
    %13 = vector.broadcast %12 : vector<128x1xf32> to vector<128x256xf32>
    %14 = arith.subf %10, %13 : vector<128x256xf32>
    %15 = math.exp %14 : vector<128x256xf32>
    %cst_6 = arith.constant dense<0.000000e+00> : vector<128xf32>
    %16 = vector.multi_reduction <add>, %15, %cst_6 [1] : vector<128x256xf32> to vector<128xf32>
    %17 = vector.shape_cast %16 : vector<128xf32> to vector<128x1xf32>
    %cst_7 = arith.constant 1.000000e+00 : f32
    %18 = vector.broadcast %cst_7 : f32 to vector<128x1xf32>
    %19 = arith.divf %18, %17 : vector<128x1xf32>
    %20 = arith.index_cast %4 : i32 to index
    %c0_8 = arith.constant 0 : index
    %21 = vector.load %arg7[%20, %c0_8] : memref<256x4xf32, #tpu.memory_space<vmem>>, vector<128x4xf32>
    %22 = vector.broadcast %19 : vector<128x1xf32> to vector<128x4xf32>
    %23 = arith.mulf %21, %22 : vector<128x4xf32>
    %c0_9 = arith.constant 0 : index
    %c0_10 = arith.constant 0 : index
    %24 = vector.load %arg8[%c0_9, %c0_10] : memref<4x256xf32, #tpu.memory_space<vmem>>, vector<4x256xf32>
    %cst_11 = arith.constant dense<0.000000e+00> : vector<4x256xf32>
    %25 = tpu.matmul %23, %15, %cst_11 {dimension_numbers = #tpu.dot_dimension_numbers<[0], [0], [1], [1], [0, 1, 1, 1], [], []>} : vector<128x4xf32>, vector<128x256xf32>, vector<4x256xf32> -> vector<4x256xf32>
    %26 = arith.addf %24, %25 : vector<4x256xf32>
    %c0_12 = arith.constant 0 : index
    %c0_13 = arith.constant 0 : index
    %27 = vector.load %arg8[%c0_12, %c0_13] : memref<4x256xf32, #tpu.memory_space<vmem>>, vector<4x256xf32>
    tpu.vector_store %arg8[%c0_12, %c0_13], %26 {strides = array<i32>} : memref<4x256xf32, #tpu.memory_space<vmem>>, vector<4x256xf32>,
    %c1_i32 = arith.constant 1 : i32
    %28 = arith.cmpi eq, %arg1, %c1_i32 : i32
    %29 = arith.extui %28 : i1 to i32
    %c0_i32_14 = arith.constant 0 : i32
    %30 = arith.cmpi ne, %29, %c0_i32_14 : i32
    scf.if %30 {
      %c0_15 = arith.constant 0 : index
      %c0_16 = arith.constant 0 : index
      %31 = vector.load %arg8[%c0_15, %c0_16] : memref<4x256xf32, #tpu.memory_space<vmem>>, vector<4x256xf32>
      %c0_17 = arith.constant 0 : index
      %c0_18 = arith.constant 0 : index
      %c0_19 = arith.constant 0 : index
      %32 = vector.load %arg6[%c0_17, %c0_18, %c0_19] : memref<1x4x256xf32, #tpu.memory_space<vmem>>, vector<1x4x256xf32>
      %33 = vector.shape_cast %32 : vector<1x4x256xf32> to vector<4x256xf32>
      %34 = vector.shape_cast %31 : vector<4x256xf32> to vector<1x4x256xf32>
      tpu.vector_store %arg6[%c0_17, %c0_18, %c0_19], %34 {strides = array<i32>} : memref<1x4x256xf32, #tpu.memory_space<vmem>>, vector<1x4x256xf32>,
    } else {
    }
    return
  }
  func.func @transform_0(%arg0: i32, %arg1: i32) -> (i32, i32, i32) {
    %c0_i32 = arith.constant 0 : i32
    %c0_i32_0 = arith.constant 0 : i32
    %c0_i32_1 = arith.constant 0 : i32
    return %arg0, %c0_i32, %c0_i32_0 : i32, i32, i32
  }
  func.func @transform_1(%arg0: i32, %arg1: i32) -> (i32, i32) {
    %c0_i32 = arith.constant 0 : i32
    %c0_i32_0 = arith.constant 0 : i32
    %c0_i32_1 = arith.constant 0 : i32
    return %c0_i32, %c0_i32_0 : i32, i32
  }
  func.func @transform_2(%arg0: i32, %arg1: i32) -> (i32, i32) {
    %c0_i32 = arith.constant 0 : i32
    %c0_i32_0 = arith.constant 0 : i32
    %c0_i32_1 = arith.constant 0 : i32
    return %c0_i32, %c0_i32_0 : i32, i32
  }
  func.func @transform_3(%arg0: i32, %arg1: i32) -> (i32, i32) {
    %c0_i32 = arith.constant 0 : i32
    %c0_i32_0 = arith.constant 0 : i32
    %c0_i32_1 = arith.constant 0 : i32
    return %c0_i32, %c0_i32_0 : i32, i32
  }
  func.func @transform_4(%arg0: i32, %arg1: i32) -> (i32, i32, i32) {
    %c0_i32 = arith.constant 0 : i32
    %c0_i32_0 = arith.constant 0 : i32
    %c0_i32_1 = arith.constant 0 : i32
    return %arg0, %c0_i32, %c0_i32_0 : i32, i32, i32
  }
}

</mosaic_0001>

<bundles_post_ra>
// kernel: tpu_custom_call.1
= control target key start
LH: loop header
LB: loop body
LE: loop exit
PB: predicated region body
PF: predicated region fallthrough
CT: control target
= control target key end

     0   :  { %9 = vsyncpa [#allocation5], 0  ;;  %s3094_s0 = inlined_call_operand.vmem [shape: f32[2,4,256], index: 0, kind: input, shape index: {}]   ;;  %s3095_s1 = inlined_call_operand.vmem [shape: f32[4,4], index: 1, kind: input, shape index: {}]   ;;  %s3096_s2 = inlined_call_operand.vmem [shape: f32[4,4], index: 2, kind: input, shape index: {}]   ;;  %s3097_s3 = inlined_call_operand.vmem [shape: f32[256,4], index: 3, kind: input, shape index: {}]   ;;  %s3098_s4 = inlined_call_operand.hbm [shape: f32[2,4,256], index: 4, kind: output, shape index: {}]  }
   0x1   :  { %11 = vsyncpa [#allocation5 + $0x1], 0  ;;  %s2568_s15 = smov 0   ;;  %s2570_s16 = smov 0  }
   0x2   :  { %s2572_s17 = smov 0   ;;  %s2574_s18 = smov 0  }
   0x3   :  { %s2576_s19 = smov 0   ;;  %s2578_s20 = smov 0  }
   0x4   :  { %s2580_s21 = smov 0   ;;  %s2582_s22 = smov 0  }
   0x5 LB: > { %s1894_s23 = sadd.s32 4294967295, %s2537_s22   ;;  %s1895_s24 = sadd.s32 4294967294, %s2537_s22   ;;  %s2537_s22 = sphi %s2582_s22, %s17_s22   ;;  %s2533_s21 = sphi %s2580_s21, %s3109_s21   ;;  %s2529_s20 = sphi %s2578_s20, %s3108_s20   ;;  %s2525_s19 = sphi %s2576_s19, %s3107_s19   ;;  %s2521_s18 = sphi %s2574_s18, %s3106_s18   ;;  %s2517_s17 = sphi %s2572_s17, %s3105_s17   ;;  %s2513_s16 = sphi %s2570_s16, %s3104_s16   ;;  %s2509_s15 = sphi %s2568_s15, %s3103_s15  }
   0x6   : > { %s26_s25 = sadd.s32 1, %s2529_s20  ;;  %s29_s26 = sadd.s32 1, %s2533_s21 }
   0x7   : > { %p27_p0 = scmp.ge.s32.totalorder %s26_s25, 2  ;;  %p135_p1 = scmp.ne.s32.totalorder %s2517_s17, %s2513_s16 }
   0x8   : > { %p136_p2 = scmp.eq.s32.totalorder %s1894_s23, 3  ;;  %p141_p4 = scmp.ne.s32.totalorder %s2513_s16, %s2509_s15 }
   0x9   : > { %s3111_s25 = smov (%p27_p0, %s26_s25), 0  ;;  %s3113_s26 = smov (!%p27_p0, %s29_s26), %s2533_s21 }
   0xa   : > { %p2617_p3 = por %p136_p2, %p135_p1  ;;  %p31_p5 = scmp.ge.s32.totalorder %s3113_s26, 2 }
   0xb   : > { %p142_p6 = scmp.eq.s32.totalorder %s1895_s24, 3  ;;  %p1898_p7 = scmp.ge.s32.totalorder %s2537_s22, 1 }
   0xc   : > { %p177_p8 = scmp.lt.s32.totalorder %s2537_s22, 5  ;;  %s3115_s26 = smov (%p31_p5, %s3113_s26), 0 }
   0xd   : > { %p2627_p9 = por %p142_p6, %p141_p4  ;;  %s122_s29 = ssub.s32 %s2533_s21, %s3115_s26 }
   0xe   : > { %p178_p10 = pnand %p1898_p7, %p177_p8  ;;  %s125_s30 = sadd.s32 1, %s2517_s17 }
   0xf   : > { %p123_p11 = scmp.eq.s32.totalorder %s122_s29, 0  ;;  %s3099_s6 = sand.u32 (!%p178_p10), 1, %s2513_s16  }
  0x10   : > { %181 = sbr.rel (%p178_p10) target bundleno = 2164 (0x874), region = 36  ;;  %p203_p12 = scmp.lt.s32.totalorder (!%p178_p10), %s2525_s19, 1 }
  0x11   : > { %s2635_s5 = scalar_select %p123_p11, %s2517_s17, %s125_s30  }
  0x12   : > { %s2641_s7 = sshll.u32 (!%p178_p10), %s3099_s6, 3  ;;  %p1902_p13 = scmp.ne.s32.totalorder (!%p178_p10), %s2521_s18, 0 }
  0x13   : > { %s202_s13 = scalar_lea.vmem (!%p178_p10), [#allocation4], %s2641_s7 }
  0x17   : > { %s204_s8 = scalar_select %p203_p12, %s2525_s19, 1 }
  0x18   : > { %211 = sbr.rel (%p1902_p13) target bundleno = 1119 (0x45f), region = 40  ;;  %v213_v1 = vld [vmem:[%s3095_s1] sm:$0xf] (!%p1902_p13)  ;;  %vm378_vm0 = vcmask (!%p1902_p13), 1043456   ;;  %v624_v4 = vld [vmem:[%s3097_s3 + $0x88] sm:$0xff] (!%p1902_p13)  ;;  %vm281_vm1 = vcmask (!%p1902_p13), 31744  }
  0x19   : > { %s1997_s9 = sshll.u32 %s204_s8, 3  ;;  %2102 = vmatprep.subr.msk.mxu0 (!%p1902_p13), %vm378_vm0, %v213_v1  ;;  %v623_v3 = vld [vmem:[%s3097_s3 + $0x80] sm:$0xff] (!%p1902_p13)  ;;  %v608_v7 = vld [vmem:[%s3097_s3 + $0x8] sm:$0xff] (!%p1902_p13)  ;;  %v625_v9 = vld [vmem:[%s3097_s3 + $0x90] sm:$0xff] (!%p1902_p13)  ;;  %vm2540_vm2 = vmmov (!%p1902_p13), 0  }
  0x1a   : > { %s2647_s12 = scalar_lea.vmem %s3094_s0, %s1997_s9  ;;  %2103 = vmatpush3.msk.msra.mxu0 (!%p1902_p13), %vm378_vm0, %v213_v1  ;;  %v2207_v5 = vpack.c.bf16 (!%p1902_p13), %v624_v4, %v623_v3  ;;  %v607_v6 = vld [vmem:[%s3097_s3] sm:$0xff] (!%p1902_p13)  ;;  %v626_v10 = vld [vmem:[%s3097_s3 + $0x98] sm:$0xff] (!%p1902_p13)  ;;  %v609_v13 = vld [vmem:[%s3097_s3 + $0x10] sm:$0xff] (!%p1902_p13) }
  0x1b   : > { %v2652_v0 = vld [vmem:[%s2647_s12] sm:$0xff] (!%p1902_p13)  ;;  %v2209_v11 = vpack.c.bf16 (!%p1902_p13), %v608_v7, %v607_v6  ;;  %v2211_v12 = vpack.c.bf16 (!%p1902_p13), %v626_v10, %v625_v9  ;;  %v610_v14 = vld [vmem:[%s3097_s3 + $0x18] sm:$0xff] (!%p1902_p13)  ;;  %v628_v17 = vld [vmem:[%s3097_s3 + $0xa8] sm:$0xff] (!%p1902_p13) }
  0x1c   : > { %217 = vxpose.xlu0.b32.start.end [1/1] (short) (!%p1902_p13), %v2652_v0, 128  ;;  %1175 = vst [vmem:[#allocation3] sm:$0xff] (!%p1902_p13), %v2652_v0  ;;  %v2663_v2 = vcombine.high (!%p1902_p13), %v2652_v0, %v2652_v0  ;;  %2208 = vmatprep.subr.bf16.mxu0 (!%p1902_p13), %v2207_v5  ;;  %v627_v16 = vld [vmem:[%s3097_s3 + $0xa0] sm:$0xff] (!%p1902_p13)  ;;  %v2213_v18 = vpack.c.bf16 (!%p1902_p13), %v610_v14, %v609_v13  ;;  %v612_v21 = vld [vmem:[%s3097_s3 + $0x28] sm:$0xff] (!%p1902_p13)  ;;  %v629_v23 = vld [vmem:[%s3097_s3 + $0xb0] sm:$0xff] (!%p1902_p13) }
  0x1d   : > { %v2215_v19 = vpack.c.bf16 (!%p1902_p13), %v628_v17, %v627_v16  ;;  %v611_v20 = vld [vmem:[%s3097_s3 + $0x20] sm:$0xff] (!%p1902_p13)  ;;  %v630_v24 = vld [vmem:[%s3097_s3 + $0xb8] sm:$0xff] (!%p1902_p13)  ;;  %v613_v27 = vld [vmem:[%s3097_s3 + $0x30] sm:$0xff] (!%p1902_p13) }
  0x1e   : > { %v2217_v25 = vpack.c.bf16 (!%p1902_p13), %v612_v21, %v611_v20  ;;  %v2219_v26 = vpack.c.bf16 (!%p1902_p13), %v630_v24, %v629_v23  ;;  %v614_v28 = vld [vmem:[%s3097_s3 + $0x38] sm:$0xff] (!%p1902_p13)  ;;  %v631_v30 = vld [vmem:[%s3097_s3 + $0xc0] sm:$0xff] (!%p1902_p13)  ;;  %v632_v31 = vld [vmem:[%s3097_s3 + $0xc8] sm:$0xff] (!%p1902_p13)  ;;  %v2539_v24 = vmov (!%p1902_p13), 0.0  }
  0x1f   : > { %v2221_v32 = vpack.c.bf16 %v614_v28, %v613_v27  ;;  %v2223_v33 = vpack.c.bf16 %v632_v31, %v631_v30  ;;  %v615_v34 = vld [vmem:[%s3097_s3 + $0x40] sm:$0xff]  ;;  %v616_v35 = vld [vmem:[%s3097_s3 + $0x48] sm:$0xff]  ;;  %v633_v37 = vld [vmem:[%s3097_s3 + $0xd0] sm:$0xff]  ;;  %2152 = vmatprep.subr.mxu1 %v2539_v24  ;;  %2154 = vmatprep.mubr.msk.f32.mxu1 %vm2540_vm2, %v2539_v24 }
  0x20   : > { %v634_v38 = vld [vmem:[%s3097_s3 + $0xd8] sm:$0xff]  ;;  %v2225_v39 = vpack.c.bf16 %v616_v35, %v615_v34  ;;  %v617_v41 = vld [vmem:[%s3097_s3 + $0x50] sm:$0xff]  ;;  %v635_v44 = vld [vmem:[%s3097_s3 + $0xe0] sm:$0xff] }
  0x21   : > { %v2227_v40 = vpack.c.bf16 %v634_v38, %v633_v37  ;;  %v618_v42 = vld [vmem:[%s3097_s3 + $0x58] sm:$0xff]  ;;  %v636_v45 = vld [vmem:[%s3097_s3 + $0xe8] sm:$0xff]  ;;  %v619_v48 = vld [vmem:[%s3097_s3 + $0x60] sm:$0xff] }
  0x22   : > { %v2229_v46 = vpack.c.bf16 %v618_v42, %v617_v41  ;;  %v2231_v47 = vpack.c.bf16 %v636_v45, %v635_v44  ;;  %v620_v49 = vld [vmem:[%s3097_s3 + $0x68] sm:$0xff]  ;;  %v637_v51 = vld [vmem:[%s3097_s3 + $0xf0] sm:$0xff]  ;;  %v638_v52 = vld [vmem:[%s3097_s3 + $0xf8] sm:$0xff] }
  0x23   : > { %v2233_v53 = vpack.c.bf16 %v620_v49, %v619_v48  ;;  %v2235_v54 = vpack.c.bf16 %v638_v52, %v637_v51  ;;  %v621_v55 = vld [vmem:[%s3097_s3 + $0x70] sm:$0xff]  ;;  %v622_v56 = vld [vmem:[%s3097_s3 + $0x78] sm:$0xff] }
  0x24   : > { %v2237_v58 = vpack.c.bf16 %v622_v56, %v621_v55 }
  0x59   : > { %249 = vxpose.xlu0.b32.start.end [1/1] (short) %v2663_v2, 128 }
  0x9c   : > { %v233_v8 = vpop.trf.xlu0 }
  0x9d   : > { %2104 = vmatprep.mubr.msk.f32.mxu0 %vm281_vm1, %v233_v8 }
  0xa0   : > { %v234_v15 = vpop.trf.xlu0 }
  0xa1   : > { %2105 = vmatmul.mubr.msk.f32.vlgmr.msra.gmra.mrb[0].mxu0 %vm281_vm1, %v234_v15 }
  0xa2   : > { %2210 = vmatpush3.bf16.msra.mxu0 %v2209_v11 }
  0xa3   : > { %2212 = vmatprep.subr.bf16.mxu0 %v2211_v12 }
  0xa4   : > { %v235_v22 = vpop.trf.xlu0 }
  0xa5   : > { %2107 = vmatprep.mubr.msk.f32.mxu0 %vm281_vm1, %v235_v22  ;;  %v709_v22 = vld [vmem:[%s3096_s2] sm:$0xf] }
  0xa6   : > { %2214 = vmatpush3.bf16.msra.mxu0 %v2213_v18  ;;  %2153 = vmatpush3.msk.msra.mxu1 %vm378_vm0, %v709_v22 }
  0xa7   : > { %2216 = vmatprep.subr.bf16.mxu0 %v2215_v19 }
  0xa8   : > { %v236_v29 = vpop.trf.xlu0 }
  0xa9   : > { %2108 = vmatmul.mubr.msk.f32.gmra.mrb[2].mxu0 %vm281_vm1, %v236_v29 }
  0xaa   : > { %2218 = vmatpush3.bf16.msra.mxu0 %v2217_v25 }
  0xab   : > { %2220 = vmatprep.subr.bf16.mxu0 %v2219_v26 }
  0xac   : > { %v237_v36 = vpop.trf.xlu0 }
  0xad   : > { %2110 = vmatprep.mubr.msk.f32.mxu0 %vm281_vm1, %v237_v36 }
  0xae   : > { %2222 = vmatpush3.bf16.msra.mxu0 %v2221_v32 }
  0xaf   : > { %2224 = vmatprep.subr.bf16.mxu0 %v2223_v33 }
  0xb0   : > { %v238_v43 = vpop.trf.xlu0 }
  0xb1   : > { %2111 = vmatmul.mubr.msk.f32.gmra.mrb[4].mxu0 %vm281_vm1, %v238_v43 }
  0xb2   : > { %2226 = vmatpush3.bf16.msra.mxu0 %v2225_v39 }
  0xb3   : > { %2228 = vmatprep.subr.bf16.mxu0 %v2227_v40 }
  0xb4   : > { %v239_v50 = vpop.trf.xlu0 }
  0xb5   : > { %2113 = vmatprep.mubr.msk.f32.mxu0 %vm281_vm1, %v239_v50 }
  0xb6   : > { %2230 = vmatpush3.bf16.msra.mxu0 %v2229_v46 }
  0xb7   : > { %2232 = vmatprep.subr.bf16.mxu0 %v2231_v47 }
  0xb8   : > { %v240_v57 = vpop.trf.xlu0 }
  0xb9   : > { %2114 = vmatmul.mubr.msk.f32.gmra.mrb[6].mxu0 %vm281_vm1, %v240_v57 }
  0xba   : > { %2234 = vmatpush3.bf16.msra.mxu0 %v2233_v53 }
  0xbb   : > { %2236 = vmatprep.subr.bf16.mxu0 %v2235_v54 }
  0xbc   : > { %v241_v59 = vpop.trf.xlu0 }
  0xbd   : > { %2116 = vmatprep.mubr.msk.f32.mxu0 %vm281_vm1, %v241_v59 }
  0xbe   : > { %2238 = vmatpush3.bf16.msra.mxu0 %v2237_v58 }
  0xc0   : > { %v242_v60 = vpop.trf.xlu0 }
  0xc1   : > { %2117 = vmatmul.mubr.msk.f32.gmra.mrb[8].mxu0 %vm281_vm1, %v242_v60 }
  0xc4   : > { %v243_v61 = vpop.trf.xlu0 }
  0xc5   : > { %2119 = vmatprep.mubr.msk.f32.mxu0 %vm281_vm1, %v243_v61 }
  0xc8   : > { %v244_v62 = vpop.trf.xlu0 }
  0xc9   : > { %2120 = vmatmul.mubr.msk.f32.gmra.mrb[10].mxu0 %vm281_vm1, %v244_v62 }
  0xcc   : > { %v245_v63 = vpop.trf.xlu0 }
  0xcd   : > { %2122 = vmatprep.mubr.msk.f32.mxu0 %vm281_vm1, %v245_v63 }
  0xd0   : > { %v246_v1 = vpop.trf.xlu0 }
  0xd1   : > { %2123 = vmatmul.mubr.msk.f32.gmra.mrb[12].mxu0 %vm281_vm1, %v246_v1 }
  0xd4   : > { %v247_v3 = vpop.trf.xlu0 }
  0xd5   : > { %2125 = vmatprep.mubr.msk.f32.mxu0 %vm281_vm1, %v247_v3 }
  0xd8   : > { %v248_v4 = vpop.trf.xlu0 }
  0xd9   : > { %2126 = vmatmul.mubr.msk.f32.gmra.mrb[14].mxu0 %vm281_vm1, %v248_v4 }
  0xdc   : > { %v265_v5 = vpop.trf.xlu0 }
  0xdd   : > { %2128 = vmatprep.mubr.msk.f32.mxu0 %vm281_vm1, %v265_v5 }
  0xe0   : > { %v266_v6 = vpop.trf.xlu0 }
  0xe1   : > { %2129 = vmatmul.mubr.msk.f32.gmra.mrb[16].mxu0 %vm281_vm1, %v266_v6 }
  0xe4   : > { %v267_v7 = vpop.trf.xlu0 }
  0xe5   : > { %2131 = vmatprep.mubr.msk.f32.mxu0 %vm281_vm1, %v267_v7 }
  0xe8   : > { %v268_v8 = vpop.trf.xlu0 }
  0xe9   : > { %2132 = vmatmul.mubr.msk.f32.gmra.mrb[18].mxu0 %vm281_vm1, %v268_v8 }
  0xec   : > { %v269_v9 = vpop.trf.xlu0 }
  0xed   : > { %2134 = vmatprep.mubr.msk.f32.mxu0 %vm281_vm1, %v269_v9 }
  0xf0   : > { %v270_v10 = vpop.trf.xlu0 }
  0xf1   : > { %2135 = vmatmul.mubr.msk.f32.gmra.mrb[20].mxu0 %vm281_vm1, %v270_v10 }
  0xf4   : > { %v271_v11 = vpop.trf.xlu0 }
  0xf5   : > { %2137 = vmatprep.mubr.msk.f32.mxu0 %vm281_vm1, %v271_v11 }
  0xf8   : > { %v272_v12 = vpop.trf.xlu0 }
  0xf9   : > { %2138 = vmatmul.mubr.msk.f32.gmra.mrb[22].mxu0 %vm281_vm1, %v272_v12 }
  0xfc   : > { %v273_v13 = vpop.trf.xlu0 }
  0xfd   : > { %2140 = vmatprep.mubr.msk.f32.mxu0 %vm281_vm1, %v273_v13 }
 0x100   : > { %v274_v14 = vpop.trf.xlu0 }
 0x101   : > { %2141 = vmatmul.mubr.msk.f32.gmra.mrb[24].mxu0 %vm281_vm1, %v274_v14 }
 0x104   : > { %v275_v15 = vpop.trf.xlu0 }
 0x105   : > { %2143 = vmatprep.mubr.msk.f32.mxu0 %vm281_vm1, %v275_v15 }
 0x108   : > { %v276_v16 = vpop.trf.xlu0 }
 0x109   : > { %2144 = vmatmul.mubr.msk.f32.gmra.mrb[26].mxu0 %vm281_vm1, %v276_v16 }
 0x10c   : > { %v277_v17 = vpop.trf.xlu0 }
 0x10d   : > { %2146 = vmatprep.mubr.msk.f32.mxu0 %vm281_vm1, %v277_v17 }
 0x110   : > { %v278_v18 = vpop.trf.xlu0 }
 0x111   : > { %2147 = vmatmul.mubr.msk.f32.gmra.mrb[28].mxu0 %vm281_vm1, %v278_v18 }
 0x114   : > { %v279_v19 = vpop.trf.xlu0 }
 0x115   : > { %2149 = vmatprep.mubr.msk.f32.mxu0 %vm281_vm1, %v279_v19 }
 0x118   : > { %v280_v20 = vpop.trf.xlu0 }
 0x119   : > { %2150 = vmatmul.mubr.msk.f32.gmra.mrb[30].mxu0 %vm281_vm1, %v280_v20 }
 0x11a   : > { %703 = vmatprep.mubr.f32.mxu0 %v2663_v2 }
 0x11d   : > { %704 = vmatmul.mubr.f32.vlgmr.msra.gmra.mrb[32].mxu0 %v2652_v0 }
 0x174   : > { %v2106_v21 = vpop.f32.mrb[0].mxu0 }
 0x175   : > { %v448_v23 = vpop.f32.mrb[1].mxu0 }
 0x17c   : > { %v2109_v25 = vpop.f32.mrb[2].mxu0 }
 0x17d   : > { %v458_v26 = vpop.f32.mrb[3].mxu0 }
 0x184   : > { %v2112_v27 = vpop.f32.mrb[4].mxu0 }
 0x185   : > { %v468_v28 = vpop.f32.mrb[5].mxu0 }
 0x18c   : > { %v2115_v29 = vpop.f32.mrb[6].mxu0 }
 0x18d   : > { %v478_v2 = vpop.f32.mrb[7].mxu0 }
 0x194   : > { %v2118_v30 = vpop.f32.mrb[8].mxu0 }
 0x195   : > { %v488_v0 = vpop.f32.mrb[9].mxu0 }
 0x19c   : > { %v2121_v31 = vpop.f32.mrb[10].mxu0 }
 0x19d   : > { %v498_v32 = vpop.f32.mrb[11].mxu0 }
 0x1a4   : > { %v2124_v33 = vpop.f32.mrb[12].mxu0 }
 0x1a5   : > { %v508_v34 = vpop.f32.mrb[13].mxu0 }
 0x1ac   : > { %v2127_v35 = vpop.f32.mrb[14].mxu0 }
 0x1ad   : > { %v518_v36 = vpop.f32.mrb[15].mxu0 }
 0x1b4   : > { %v2130_v37 = vpop.f32.mrb[16].mxu0 }
 0x1b5   : > { %v528_v38 = vpop.f32.mrb[17].mxu0 }
 0x1bc   : > { %v2133_v39 = vpop.f32.mrb[18].mxu0 }
 0x1bd   : > { %v538_v40 = vpop.f32.mrb[19].mxu0 }
 0x1c4   : > { %v2136_v41 = vpop.f32.mrb[20].mxu0 }
 0x1c5   : > { %v548_v42 = vpop.f32.mrb[21].mxu0 }
 0x1cc   : > { %v2139_v43 = vpop.f32.mrb[22].mxu0 }
 0x1cd   : > { %v558_v44 = vpop.f32.mrb[23].mxu0 }
 0x1d4   : > { %v2142_v45 = vpop.f32.mrb[24].mxu0 }
 0x1d5   : > { %v568_v46 = vpop.f32.mrb[25].mxu0 }
 0x1dc   : > { %v2145_v47 = vpop.f32.mrb[26].mxu0 }
 0x1dd   : > { %v578_v48 = vpop.f32.mrb[27].mxu0 }
 0x1e4   : > { %v2148_v49 = vpop.f32.mrb[28].mxu0 }
 0x1e5   : > { %v588_v50 = vpop.f32.mrb[29].mxu0 }
 0x1ec   : > { %v2151_v51 = vpop.f32.mrb[30].mxu0 }
 0x1ed   : > { %v598_v52 = vpop.f32.mrb[31].mxu0 }
 0x1f0   : > { %v2064_v53 = vpop.f32.mrb[32].mxu0 }
 0x1f1   : > { %v2065_v54 = vpop.f32.mrb[33].mxu0 }
 0x1f2   : > { %v2066_v55 = vadd.f32 %v2065_v54, %v2064_v53 }
 0x1f4   : > { %710 = vxpose.xlu1.b32.start.end [1/1] (short) (narrow) %v2066_v55, 8 }
 0x274   : > { %v726_v56 = vpop.trf.xlu1 }
 0x275   : > { %2155 = vmatmul.mubr.msk.f32.vlgmr.msra.gmra.mrb[0].mxu1 %vm281_vm1, %v726_v56 }
 0x276   : > { %2159 = vmatprep.mubr.msk.f32.mxu1 %vm281_vm1, %v448_v23 }
 0x348   : > { %v814_v57 = vpop.f32.mrb[0].mxu1 }
 0x349   : > { %v818_v58 = vmax.f32 %v814_v57, 0.0  ;;  %v2156_v59 = vpop.f32.mrb[1].mxu1 }
 0x34b   : > { %2157 = vmatprep.subr.msk.mxu1 %vm378_vm0, %v818_v58 }
 0x34c   : > { %2158 = vmatpush3.msk.msra.mxu1 %vm378_vm0, %v818_v58 }
 0x34d   : > { %2160 = vmatmul.mubr.msk.f32.vlgmr.msra.gmra.mrb[2].mxu1 %vm281_vm1, %v2106_v21 }
 0x34e   : > { %2162 = vmatprep.mubr.msk.f32.mxu1 %vm281_vm1, %v458_v26 }
 0x351   : > { %2163 = vmatmul.mubr.msk.f32.gmra.mrb[4].mxu1 %vm281_vm1, %v2109_v25 }
 0x352   : > { %2165 = vmatprep.mubr.msk.f32.mxu1 %vm281_vm1, %v468_v28 }
 0x355   : > { %2166 = vmatmul.mubr.msk.f32.gmra.mrb[6].mxu1 %vm281_vm1, %v2112_v27 }
 0x356   : > { %2168 = vmatprep.mubr.msk.f32.mxu1 %vm281_vm1, %v478_v2 }
 0x359   : > { %2169 = vmatmul.mubr.msk.f32.gmra.mrb[8].mxu1 %vm281_vm1, %v2115_v29 }
 0x35a   : > { %2171 = vmatprep.mubr.msk.f32.mxu1 %vm281_vm1, %v488_v0 }
 0x35d   : > { %2172 = vmatmul.mubr.msk.f32.gmra.mrb[10].mxu1 %vm281_vm1, %v2118_v30 }
 0x35e   : > { %2174 = vmatprep.mubr.msk.f32.mxu1 %vm281_vm1, %v498_v32 }
 0x361   : > { %2175 = vmatmul.mubr.msk.f32.gmra.mrb[12].mxu1 %vm281_vm1, %v2121_v31 }
 0x362   : > { %2177 = vmatprep.mubr.msk.f32.mxu1 %vm281_vm1, %v508_v34 }
 0x365   : > { %2178 = vmatmul.mubr.msk.f32.gmra.mrb[14].mxu1 %vm281_vm1, %v2124_v33 }
 0x366   : > { %2180 = vmatprep.mubr.msk.f32.mxu1 %vm281_vm1, %v518_v36 }
 0x369   : > { %2181 = vmatmul.mubr.msk.f32.gmra.mrb[16].mxu1 %vm281_vm1, %v2127_v35 }
 0x36a   : > { %2183 = vmatprep.mubr.msk.f32.mxu1 %vm281_vm1, %v528_v38 }
 0x36d   : > { %2184 = vmatmul.mubr.msk.f32.gmra.mrb[18].mxu1 %vm281_vm1, %v2130_v37 }
 0x36e   : > { %2186 = vmatprep.mubr.msk.f32.mxu1 %vm281_vm1, %v538_v40 }
 0x371   : > { %2187 = vmatmul.mubr.msk.f32.gmra.mrb[20].mxu1 %vm281_vm1, %v2133_v39 }
 0x372   : > { %2189 = vmatprep.mubr.msk.f32.mxu1 %vm281_vm1, %v548_v42 }
 0x375   : > { %2190 = vmatmul.mubr.msk.f32.gmra.mrb[22].mxu1 %vm281_vm1, %v2136_v41 }
 0x376   : > { %2192 = vmatprep.mubr.msk.f32.mxu1 %vm281_vm1, %v558_v44 }
 0x379   : > { %2193 = vmatmul.mubr.msk.f32.gmra.mrb[24].mxu1 %vm281_vm1, %v2139_v43 }
 0x37a   : > { %2195 = vmatprep.mubr.msk.f32.mxu1 %vm281_vm1, %v568_v46 }
 0x37d   : > { %2196 = vmatmul.mubr.msk.f32.gmra.mrb[26].mxu1 %vm281_vm1, %v2142_v45 }
 0x37e   : > { %2198 = vmatprep.mubr.msk.f32.mxu1 %vm281_vm1, %v578_v48 }
 0x381   : > { %2199 = vmatmul.mubr.msk.f32.gmra.mrb[28].mxu1 %vm281_vm1, %v2145_v47 }
 0x382   : > { %2201 = vmatprep.mubr.msk.f32.mxu1 %vm281_vm1, %v588_v50 }
 0x385   : > { %2202 = vmatmul.mubr.msk.f32.gmra.mrb[30].mxu1 %vm281_vm1, %v2148_v49 }
 0x386   : > { %2204 = vmatprep.mubr.msk.f32.mxu1 %vm281_vm1, %v598_v52 }
 0x389   : > { %2205 = vmatmul.mubr.msk.f32.gmra.mrb[32].mxu1 %vm281_vm1, %v2151_v51 }
 0x420   : > { %v2161_v60 = vpop.f32.mrb[2].mxu1 }
 0x421   : > { %1144 = vst.msk [vmem:[#allocation2 + $0x8] sm:$0xff] %vm281_vm1, %v2161_v60  ;;  %v984_v61 = vpop.f32.mrb[3].mxu1 }
 0x422   : > { %1143 = vst.msk [vmem:[#allocation2] sm:$0xff] %vm281_vm1, %v984_v61 }
 0x424   : > { %v2164_v62 = vpop.f32.mrb[4].mxu1 }
 0x425   : > { %1146 = vst.msk [vmem:[#allocation2 + $0x18] sm:$0xff] %vm281_vm1, %v2164_v62  ;;  %v994_v63 = vpop.f32.mrb[5].mxu1 }
 0x426   : > { %1145 = vst.msk [vmem:[#allocation2 + $0x10] sm:$0xff] %vm281_vm1, %v994_v63 }
 0x428   : > { %v2167_v1 = vpop.f32.mrb[6].mxu1 }
 0x429   : > { %1148 = vst.msk [vmem:[#allocation2 + $0x28] sm:$0xff] %vm281_vm1, %v2167_v1  ;;  %v1004_v3 = vpop.f32.mrb[7].mxu1 }
 0x42a   : > { %1147 = vst.msk [vmem:[#allocation2 + $0x20] sm:$0xff] %vm281_vm1, %v1004_v3 }
 0x42c   : > { %v2170_v4 = vpop.f32.mrb[8].mxu1 }
 0x42d   : > { %1150 = vst.msk [vmem:[#allocation2 + $0x38] sm:$0xff] %vm281_vm1, %v2170_v4  ;;  %v1014_v5 = vpop.f32.mrb[9].mxu1 }
 0x42e   : > { %1149 = vst.msk [vmem:[#allocation2 + $0x30] sm:$0xff] %vm281_vm1, %v1014_v5 }
 0x430   : > { %v2173_v6 = vpop.f32.mrb[10].mxu1 }
 0x431   : > { %1152 = vst.msk [vmem:[#allocation2 + $0x48] sm:$0xff] %vm281_vm1, %v2173_v6  ;;  %v1024_v7 = vpop.f32.mrb[11].mxu1 }
 0x432   : > { %1151 = vst.msk [vmem:[#allocation2 + $0x40] sm:$0xff] %vm281_vm1, %v1024_v7 }
 0x434   : > { %v2176_v8 = vpop.f32.mrb[12].mxu1 }
 0x435   : > { %1154 = vst.msk [vmem:[#allocation2 + $0x58] sm:$0xff] %vm281_vm1, %v2176_v8  ;;  %v1034_v9 = vpop.f32.mrb[13].mxu1 }
 0x436   : > { %1153 = vst.msk [vmem:[#allocation2 + $0x50] sm:$0xff] %vm281_vm1, %v1034_v9 }
 0x438   : > { %v2179_v10 = vpop.f32.mrb[14].mxu1 }
 0x439   : > { %1156 = vst.msk [vmem:[#allocation2 + $0x68] sm:$0xff] %vm281_vm1, %v2179_v10  ;;  %v1044_v11 = vpop.f32.mrb[15].mxu1 }
 0x43a   : > { %1155 = vst.msk [vmem:[#allocation2 + $0x60] sm:$0xff] %vm281_vm1, %v1044_v11 }
 0x43c   : > { %v2182_v12 = vpop.f32.mrb[16].mxu1 }
 0x43d   : > { %1158 = vst.msk [vmem:[#allocation2 + $0x78] sm:$0xff] %vm281_vm1, %v2182_v12  ;;  %v1054_v13 = vpop.f32.mrb[17].mxu1 }
 0x43e   : > { %1157 = vst.msk [vmem:[#allocation2 + $0x70] sm:$0xff] %vm281_vm1, %v1054_v13 }
 0x440   : > { %v2185_v14 = vpop.f32.mrb[18].mxu1 }
 0x441   : > { %1160 = vst.msk [vmem:[#allocation2 + $0x88] sm:$0xff] %vm281_vm1, %v2185_v14  ;;  %v1064_v15 = vpop.f32.mrb[19].mxu1 }
 0x442   : > { %1159 = vst.msk [vmem:[#allocation2 + $0x80] sm:$0xff] %vm281_vm1, %v1064_v15 }
 0x444   : > { %v2188_v16 = vpop.f32.mrb[20].mxu1 }
 0x445   : > { %1162 = vst.msk [vmem:[#allocation2 + $0x98] sm:$0xff] %vm281_vm1, %v2188_v16  ;;  %v1074_v17 = vpop.f32.mrb[21].mxu1 }
 0x446   : > { %1161 = vst.msk [vmem:[#allocation2 + $0x90] sm:$0xff] %vm281_vm1, %v1074_v17 }
 0x448   : > { %v2191_v18 = vpop.f32.mrb[22].mxu1 }
 0x449   : > { %1164 = vst.msk [vmem:[#allocation2 + $0xa8] sm:$0xff] %vm281_vm1, %v2191_v18  ;;  %v1084_v19 = vpop.f32.mrb[23].mxu1 }
 0x44a   : > { %1163 = vst.msk [vmem:[#allocation2 + $0xa0] sm:$0xff] %vm281_vm1, %v1084_v19 }
 0x44c   : > { %v2194_v20 = vpop.f32.mrb[24].mxu1 }
 0x44d   : > { %1166 = vst.msk [vmem:[#allocation2 + $0xb8] sm:$0xff] %vm281_vm1, %v2194_v20  ;;  %v1094_v21 = vpop.f32.mrb[25].mxu1 }
 0x44e   : > { %1165 = vst.msk [vmem:[#allocation2 + $0xb0] sm:$0xff] %vm281_vm1, %v1094_v21 }
 0x450   : > { %v2197_v22 = vpop.f32.mrb[26].mxu1 }
 0x451   : > { %1168 = vst.msk [vmem:[#allocation2 + $0xc8] sm:$0xff] %vm281_vm1, %v2197_v22  ;;  %v1104_v23 = vpop.f32.mrb[27].mxu1 }
 0x452   : > { %1167 = vst.msk [vmem:[#allocation2 + $0xc0] sm:$0xff] %vm281_vm1, %v1104_v23 }
 0x454   : > { %v2200_v24 = vpop.f32.mrb[28].mxu1 }
 0x455   : > { %1170 = vst.msk [vmem:[#allocation2 + $0xd8] sm:$0xff] %vm281_vm1, %v2200_v24  ;;  %v1114_v25 = vpop.f32.mrb[29].mxu1 }
 0x456   : > { %1169 = vst.msk [vmem:[#allocation2 + $0xd0] sm:$0xff] %vm281_vm1, %v1114_v25 }
 0x458   : > { %v2203_v26 = vpop.f32.mrb[30].mxu1 }
 0x459   : > { %1172 = vst.msk [vmem:[#allocation2 + $0xe8] sm:$0xff] %vm281_vm1, %v2203_v26  ;;  %v1124_v27 = vpop.f32.mrb[31].mxu1 }
 0x45a   : > { %1171 = vst.msk [vmem:[#allocation2 + $0xe0] sm:$0xff] %vm281_vm1, %v1124_v27 }
 0x45c   : > { %v2206_v28 = vpop.f32.mrb[32].mxu1 }
 0x45d   : > { %1174 = vst.msk [vmem:[#allocation2 + $0xf8] sm:$0xff] %vm281_vm1, %v2206_v28  ;;  %v1134_v29 = vpop.f32.mrb[33].mxu1 }
 0x45e   : > { %1173 = vst.msk [vmem:[#allocation2 + $0xf0] sm:$0xff] %vm281_vm1, %v1134_v29 }
 0x45f PF: > { %s1971_s11 = sshll.u32 %s2521_s18, 7  ;;  %v1182_v2 = vld [vmem:[%s2647_s12] sm:$0xff]  ;;  %vm1266_vm3 = vcmask 1043456   ;;  %v2541_v0 = vmov 0.0   ;;  %vm1217_vm4 = vcmask 31744   ;;  %p1991_p0 = scmp.ne.s32.totalorder %s2521_s18, 1 }
 0x460   : > { %s1177_s6 = sshra.s32 %s1971_s11, 7  ;;  %v1216_v30 = vcombine.high %v1182_v2, %v1182_v2  ;;  %1335 = vmatprep.mubr.f32.mxu0 %v2541_v0  ;;  %1786 = vmatprep.mubr.f32.mxu1 %v2541_v0 }
 0x461   : > { %s1972_s14 = sshll.u32 %s1177_s6, 2 }
 0x462   : > { %s1180_s23 = scalar_lea.vmem %s2647_s12, %s1972_s14  ;;  %1973 = vmatprep.subr.msk.mxu0 %vm1266_vm3, %v1216_v30  ;;  %s3018_s12 = scalar_lea.vmem [#allocation2], %s1971_s11 }
 0x463   : > { %v1181_v31 = vld [vmem:[%s1180_s23] sm:$0xf]  ;;  %1974 = vmatpush1.msk.msra.mxu0 %vm1266_vm3, %v1182_v2 }
 0x464   : > { %1183 = vxpose.xlu0.b32.start.end [1/1] (short) %v1181_v31, 128 }
 0x4e4   : > { %v1199_v32 = vpop.trf.xlu0 }
 0x4e5   : > { %1975 = vmatmul.mubr.msk.f32.vlgmr.msra.gmra.mrb[0].mxu0 %vm1217_vm4, %v1199_v32 }
 0x4e6   : > { %1341 = vmatprep.mubr.f32.mxu0 %v2541_v0 }
 0x4e8   : > { %v1200_v33 = vpop.trf.xlu0 }
 0x4e9   : > { %1976 = vmatmul.mubr.msk.f32.gmra.mrb[2].mxu0 %vm1217_vm4, %v1200_v33 }
 0x4ea   : > { %1347 = vmatprep.mubr.f32.mxu0 %v2541_v0 }
 0x4ec   : > { %v1201_v34 = vpop.trf.xlu0 }
 0x4ed   : > { %1977 = vmatmul.mubr.msk.f32.gmra.mrb[4].mxu0 %vm1217_vm4, %v1201_v34 }
 0x4ee   : > { %1353 = vmatprep.mubr.f32.mxu0 %v2541_v0 }
 0x4f0   : > { %v1202_v35 = vpop.trf.xlu0 }
 0x4f1   : > { %1978 = vmatmul.mubr.msk.f32.gmra.mrb[6].mxu0 %vm1217_vm4, %v1202_v35 }
 0x4f2   : > { %1359 = vmatprep.mubr.f32.mxu0 %v2541_v0 }
 0x4f4   : > { %v1203_v36 = vpop.trf.xlu0 }
 0x4f5   : > { %1979 = vmatmul.mubr.msk.f32.gmra.mrb[8].mxu0 %vm1217_vm4, %v1203_v36 }
 0x4f6   : > { %1365 = vmatprep.mubr.f32.mxu0 %v2541_v0 }
 0x4f8   : > { %v1204_v37 = vpop.trf.xlu0 }
 0x4f9   : > { %1980 = vmatmul.mubr.msk.f32.gmra.mrb[10].mxu0 %vm1217_vm4, %v1204_v37 }
 0x4fa   : > { %1371 = vmatprep.mubr.f32.mxu0 %v2541_v0 }
 0x4fc   : > { %v1205_v38 = vpop.trf.xlu0 }
 0x4fd   : > { %1981 = vmatmul.mubr.msk.f32.gmra.mrb[12].mxu0 %vm1217_vm4, %v1205_v38 }
 0x4fe   : > { %1377 = vmatprep.mubr.f32.mxu0 %v2541_v0 }
 0x500   : > { %v1206_v39 = vpop.trf.xlu0 }
 0x501   : > { %1982 = vmatmul.mubr.msk.f32.gmra.mrb[14].mxu0 %vm1217_vm4, %v1206_v39 }
 0x502   : > { %1383 = vmatprep.mubr.f32.mxu0 %v2541_v0 }
 0x504   : > { %v1207_v40 = vpop.trf.xlu0 }
 0x505   : > { %1983 = vmatmul.mubr.msk.f32.gmra.mrb[16].mxu0 %vm1217_vm4, %v1207_v40 }
 0x506   : > { %1389 = vmatprep.mubr.f32.mxu0 %v2541_v0 }
 0x508   : > { %v1208_v41 = vpop.trf.xlu0 }
 0x509   : > { %1984 = vmatmul.mubr.msk.f32.gmra.mrb[18].mxu0 %vm1217_vm4, %v1208_v41 }
 0x50a   : > { %1395 = vmatprep.mubr.f32.mxu0 %v2541_v0 }
 0x50c   : > { %v1209_v42 = vpop.trf.xlu0 }
 0x50d   : > { %1985 = vmatmul.mubr.msk.f32.gmra.mrb[20].mxu0 %vm1217_vm4, %v1209_v42 }
 0x50e   : > { %1401 = vmatprep.mubr.f32.mxu0 %v2541_v0 }
 0x510   : > { %v1210_v43 = vpop.trf.xlu0 }
 0x511   : > { %1986 = vmatmul.mubr.msk.f32.gmra.mrb[22].mxu0 %vm1217_vm4, %v1210_v43 }
 0x512   : > { %1407 = vmatprep.mubr.f32.mxu0 %v2541_v0 }
 0x514   : > { %v1211_v44 = vpop.trf.xlu0 }
 0x515   : > { %1987 = vmatmul.mubr.msk.f32.gmra.mrb[24].mxu0 %vm1217_vm4, %v1211_v44 }
 0x516   : > { %1413 = vmatprep.mubr.f32.mxu0 %v2541_v0 }
 0x518   : > { %v1212_v45 = vpop.trf.xlu0 }
 0x519   : > { %1988 = vmatmul.mubr.msk.f32.gmra.mrb[26].mxu0 %vm1217_vm4, %v1212_v45 }
 0x51a   : > { %1419 = vmatprep.mubr.f32.mxu0 %v2541_v0 }
 0x51c   : > { %v1213_v46 = vpop.trf.xlu0 }
 0x51d   : > { %1989 = vmatmul.mubr.msk.f32.gmra.mrb[28].mxu0 %vm1217_vm4, %v1213_v46 }
 0x51e   : > { %1425 = vmatprep.mubr.f32.mxu0 %v2541_v0 }
 0x520   : > { %v1214_v47 = vpop.trf.xlu0 }
 0x521   : > { %1990 = vmatmul.mubr.msk.f32.gmra.mrb[30].mxu0 %vm1217_vm4, %v1214_v47 }
 0x5b8   : > { %v2888_v48 = vpop.f32.mrb[0].mxu0 }
 0x5b9   : > { %v2890_v49 = vpop.f32.mrb[1].mxu0 }
 0x5ba   : > { %v1432_v50 = vmax.f32 %v2888_v48, %v2890_v49 }
 0x5bc   : > { %1433 = vmax.xlane.f32.xlu0 %v1432_v50  ;;  %v2894_v51 = vpop.f32.mrb[2].mxu0 }
 0x5bd   : > { %v2896_v52 = vpop.f32.mrb[3].mxu0 }
 0x5be   : > { %v1435_v53 = vmax.f32 %v2894_v51, %v2896_v52 }
 0x5c0   : > { %1436 = vmax.xlane.f32.xlu1 %v1435_v53  ;;  %v2900_v54 = vpop.f32.mrb[4].mxu0 }
 0x5c1   : > { %v2902_v55 = vpop.f32.mrb[5].mxu0 }
 0x5c2   : > { %v1438_v56 = vmax.f32 %v2900_v54, %v2902_v55 }
 0x5c4   : > { %1439 = vmax.xlane.f32.xlu1 %v1438_v56  ;;  %v2906_v57 = vpop.f32.mrb[6].mxu0 }
 0x5c5   : > { %v2908_v58 = vpop.f32.mrb[7].mxu0 }
 0x5c6   : > { %v1441_v59 = vmax.f32 %v2906_v57, %v2908_v58 }
 0x5c8   : > { %1442 = vmax.xlane.f32.xlu1 %v1441_v59  ;;  %v2912_v60 = vpop.f32.mrb[8].mxu0 }
 0x5c9   : > { %v2914_v61 = vpop.f32.mrb[9].mxu0 }
 0x5ca   : > { %v1444_v62 = vmax.f32 %v2912_v60, %v2914_v61 }
 0x5cc   : > { %1445 = vmax.xlane.f32.xlu1 %v1444_v62  ;;  %v2918_v63 = vpop.f32.mrb[10].mxu0 }
 0x5cd   : > { %v2920_v1 = vpop.f32.mrb[11].mxu0 }
 0x5ce   : > { %v1447_v3 = vmax.f32 %v2918_v63, %v2920_v1 }
 0x5d0   : > { %1448 = vmax.xlane.f32.xlu1 %v1447_v3  ;;  %v2924_v4 = vpop.f32.mrb[12].mxu0 }
 0x5d1   : > { %v2926_v5 = vpop.f32.mrb[13].mxu0 }
 0x5d2   : > { %v1450_v6 = vmax.f32 %v2924_v4, %v2926_v5 }
 0x5d4   : > { %1451 = vmax.xlane.f32.xlu1 %v1450_v6  ;;  %v2930_v7 = vpop.f32.mrb[14].mxu0 }
 0x5d5   : > { %v2932_v8 = vpop.f32.mrb[15].mxu0 }
 0x5d6   : > { %v1453_v9 = vmax.f32 %v2930_v7, %v2932_v8 }
 0x5d8   : > { %1454 = vmax.xlane.f32.xlu1 %v1453_v9  ;;  %v2936_v10 = vpop.f32.mrb[16].mxu0 }
 0x5d9   : > { %v2938_v11 = vpop.f32.mrb[17].mxu0 }
 0x5da   : > { %v1456_v12 = vmax.f32 %v2936_v10, %v2938_v11 }
 0x5dc   : > { %1457 = vmax.xlane.f32.xlu1 %v1456_v12  ;;  %v2942_v13 = vpop.f32.mrb[18].mxu0 }
 0x5dd   : > { %v2944_v14 = vpop.f32.mrb[19].mxu0 }
 0x5de   : > { %v1459_v15 = vmax.f32 %v2942_v13, %v2944_v14 }
 0x5e0   : > { %1460 = vmax.xlane.f32.xlu1 %v1459_v15  ;;  %v2948_v16 = vpop.f32.mrb[20].mxu0 }
 0x5e1   : > { %v2950_v17 = vpop.f32.mrb[21].mxu0 }
 0x5e2   : > { %v1462_v18 = vmax.f32 %v2948_v16, %v2950_v17 }
 0x5e4   : > { %1463 = vmax.xlane.f32.xlu1 %v1462_v18  ;;  %v2954_v19 = vpop.f32.mrb[22].mxu0 }
 0x5e5   : > { %v2956_v20 = vpop.f32.mrb[23].mxu0 }
 0x5e6   : > { %v1465_v21 = vmax.f32 %v2954_v19, %v2956_v20 }
 0x5e8   : > { %1466 = vmax.xlane.f32.xlu1 %v1465_v21  ;;  %v2960_v22 = vpop.f32.mrb[24].mxu0 }
 0x5e9   : > { %v2962_v23 = vpop.f32.mrb[25].mxu0 }
 0x5ea   : > { %v1468_v24 = vmax.f32 %v2960_v22, %v2962_v23 }
 0x5ec   : > { %1469 = vmax.xlane.f32.xlu1 %v1468_v24  ;;  %v2966_v25 = vpop.f32.mrb[26].mxu0 }
 0x5ed   : > { %v2968_v26 = vpop.f32.mrb[27].mxu0 }
 0x5ee   : > { %v1471_v27 = vmax.f32 %v2966_v25, %v2968_v26 }
 0x5f0   : > { %1472 = vmax.xlane.f32.xlu1 %v1471_v27  ;;  %v2972_v28 = vpop.f32.mrb[28].mxu0 }
 0x5f1   : > { %v2974_v29 = vpop.f32.mrb[29].mxu0 }
 0x5f2   : > { %v1474_v2 = vmax.f32 %v2972_v28, %v2974_v29 }
 0x5f4   : > { %1475 = vmax.xlane.f32.xlu1 %v1474_v2  ;;  %v2978_v30 = vpop.f32.mrb[30].mxu0 }
 0x5f5   : > { %v2980_v0 = vpop.f32.mrb[31].mxu0 }
 0x5f6   : > { %v1477_v31 = vmax.f32 %v2978_v30, %v2980_v0 }
 0x5f8   : > { %1478 = vmax.xlane.f32.xlu1 %v1477_v31 }
 0x649   : > { %v1434_v32 = vpop.xlane.xlu0 %1433 }
 0x64a   : > { %v1480_v33 = vsub.f32 %v2888_v48, %v1434_v32  ;;  %v1481_v34 = vsub.f32 %v2890_v49, %v1434_v32 }
 0x64c   : > { %v1512_v35 = vmul.f32 1.442695, %v1480_v33  ;;  %v1514_v36 = vmul.f32 1.442695, %v1481_v34 }
 0x64d   : > { %v1437_v37 = vpop.xlane.xlu1 %1436 }
 0x64e   : > { %2347 = vpow2.f32 %v1512_v35  ;;  %v1482_v38 = vsub.f32 %v2894_v51, %v1437_v37  ;;  %v1483_v39 = vsub.f32 %v2896_v52, %v1437_v37 }
 0x64f   : > { %2349 = vpow2.f32 %v1514_v36 }
 0x650   : > { %v1516_v40 = vmul.f32 1.442695, %v1482_v38  ;;  %v1518_v41 = vmul.f32 1.442695, %v1483_v39 }
 0x651   : > { %v1440_v42 = vpop.xlane.xlu1 %1439 }
 0x652   : > { %2351 = vpow2.f32 %v1516_v40  ;;  %v1484_v43 = vsub.f32 %v2900_v54, %v1440_v42  ;;  %v1485_v44 = vsub.f32 %v2902_v55, %v1440_v42 }
 0x653   : > { %2353 = vpow2.f32 %v1518_v41 }
 0x654   : > { %v1520_v45 = vmul.f32 1.442695, %v1484_v43  ;;  %v1522_v46 = vmul.f32 1.442695, %v1485_v44 }
 0x655   : > { %v1443_v47 = vpop.xlane.xlu1 %1442 }
 0x656   : > { %2355 = vpow2.f32 %v1520_v45  ;;  %v1486_v48 = vsub.f32 %v2906_v57, %v1443_v47  ;;  %v1487_v49 = vsub.f32 %v2908_v58, %v1443_v47 }
 0x657   : > { %2357 = vpow2.f32 %v1522_v46 }
 0x658   : > { %v2348_v50 = vpop.eup %2347  ;;  %v1524_v51 = vmul.f32 1.442695, %v1486_v48  ;;  %v1526_v52 = vmul.f32 1.442695, %v1487_v49 }
 0x659   : > { %v2350_v53 = vpop.eup %2349  ;;  %v1446_v56 = vpop.xlane.xlu1 %1445 }
 0x65a   : > { %2359 = vpow2.f32 %v1524_v51  ;;  %v1488_v54 = vsub.f32 %v2912_v60, %v1446_v56  ;;  %v1489_v55 = vsub.f32 %v2914_v61, %v1446_v56  ;;  %v1576_v59 = vadd.f32 %v2350_v53, %v2348_v50 }
 0x65b   : > { %2361 = vpow2.f32 %v1526_v52 }
 0x65c   : > { %v2352_v62 = vpop.eup %2351  ;;  %v1528_v3 = vmul.f32 1.442695, %v1488_v54  ;;  %v1530_v6 = vmul.f32 1.442695, %v1489_v55  ;;  %1577 = vadd.xlane.f32.xlu1 %v1576_v59 }
 0x65d   : > { %v2354_v57 = vpop.eup %2353  ;;  %v1449_v9 = vpop.xlane.xlu1 %1448  ;;  %v2241_v58 = vpack.c.bf16 %v2352_v62, %v2348_v50 }
 0x65e   : > { %2363 = vpow2.f32 %v1528_v3  ;;  %v1490_v12 = vsub.f32 %v2918_v63, %v1449_v9  ;;  %v1491_v15 = vsub.f32 %v2920_v1, %v1449_v9  ;;  %v2239_v18 = vpack.c.bf16 %v2354_v57, %v2350_v53 }
 0x65f   : > { %2365 = vpow2.f32 %v1530_v6  ;;  %v1579_v21 = vadd.f32 %v2354_v57, %v2352_v62 }
 0x660   : > { %v2356_v60 = vpop.eup %2355  ;;  %v1532_v24 = vmul.f32 1.442695, %v1490_v12  ;;  %v1534_v61 = vmul.f32 1.442695, %v1491_v15  ;;  %2240 = vmatprep.subr.bf16.mxu1 %v2239_v18 }
 0x661   : > { %v2358_v27 = vpop.eup %2357  ;;  %1580 = vadd.xlane.f32.xlu1 %v1579_v21  ;;  %2242 = vmatpush1.bf16.msra.mxu1 %v2241_v58  ;;  %v1452_v2 = vpop.xlane.xlu1 %1451 }
 0x662   : > { %2367 = vpow2.f32 %v1532_v24  ;;  %v1492_v31 = vsub.f32 %v2924_v4, %v1452_v2  ;;  %v1493_v32 = vsub.f32 %v2926_v5, %v1452_v2  ;;  %v1582_v33 = vadd.f32 %v2358_v27, %v2356_v60 }
 0x663   : > { %2369 = vpow2.f32 %v1534_v61 }
 0x664   : > { %v2360_v63 = vpop.eup %2359  ;;  %v1536_v1 = vmul.f32 1.442695, %v1492_v31  ;;  %v1538_v34 = vmul.f32 1.442695, %v1493_v32 }
 0x665   : > { %v2362_v35 = vpop.eup %2361  ;;  %1583 = vadd.xlane.f32.xlu1 %v1582_v33  ;;  %v1455_v36 = vpop.xlane.xlu1 %1454  ;;  %v2245_v37 = vpack.c.bf16 %v2360_v63, %v2356_v60 }
 0x666   : > { %2371 = vpow2.f32 %v1536_v1  ;;  %v1494_v38 = vsub.f32 %v2930_v7, %v1455_v36  ;;  %v1495_v39 = vsub.f32 %v2932_v8, %v1455_v36  ;;  %v2243_v40 = vpack.c.bf16 %v2362_v35, %v2358_v27 }
 0x667   : > { %2373 = vpow2.f32 %v1538_v34  ;;  %v1585_v41 = vadd.f32 %v2362_v35, %v2360_v63 }
 0x668   : > { %v2364_v4 = vpop.eup %2363  ;;  %v1540_v42 = vmul.f32 1.442695, %v1494_v38  ;;  %v1542_v5 = vmul.f32 1.442695, %v1495_v39  ;;  %2244 = vmatprep.subr.bf16.mxu1 %v2243_v40 }
 0x669   : > { %v2366_v43 = vpop.eup %2365  ;;  %1586 = vadd.xlane.f32.xlu1 %v1585_v41  ;;  %2246 = vmatpush1.bf16.msra.mxu1 %v2245_v37  ;;  %v1458_v44 = vpop.xlane.xlu1 %1457 }
 0x66a   : > { %2375 = vpow2.f32 %v1540_v42  ;;  %v1496_v45 = vsub.f32 %v2936_v10, %v1458_v44  ;;  %v1497_v46 = vsub.f32 %v2938_v11, %v1458_v44  ;;  %v1588_v47 = vadd.f32 %v2366_v43, %v2364_v4 }
 0x66b   : > { %2377 = vpow2.f32 %v1542_v5 }
 0x66c   : > { %v2368_v7 = vpop.eup %2367  ;;  %v1544_v8 = vmul.f32 1.442695, %v1496_v45  ;;  %v1546_v48 = vmul.f32 1.442695, %v1497_v46 }
 0x66d   : > { %v2370_v49 = vpop.eup %2369  ;;  %1589 = vadd.xlane.f32.xlu1 %v1588_v47  ;;  %v1461_v50 = vpop.xlane.xlu1 %1460  ;;  %v2249_v51 = vpack.c.bf16 %v2368_v7, %v2364_v4 }
 0x66e   : > { %2379 = vpow2.f32 %v1544_v8  ;;  %v1498_v52 = vsub.f32 %v2942_v13, %v1461_v50  ;;  %v1499_v53 = vsub.f32 %v2944_v14, %v1461_v50  ;;  %v2247_v56 = vpack.c.bf16 %v2370_v49, %v2366_v43 }
 0x66f   : > { %2381 = vpow2.f32 %v1546_v48  ;;  %v1591_v54 = vadd.f32 %v2370_v49, %v2368_v7 }
 0x670   : > { %v2372_v10 = vpop.eup %2371  ;;  %v1548_v55 = vmul.f32 1.442695, %v1498_v52  ;;  %v1550_v11 = vmul.f32 1.442695, %v1499_v53  ;;  %2248 = vmatprep.subr.bf16.mxu1 %v2247_v56 }
 0x671   : > { %v2374_v59 = vpop.eup %2373  ;;  %1592 = vadd.xlane.f32.xlu1 %v1591_v54  ;;  %2250 = vmatpush1.bf16.msra.mxu1 %v2249_v51  ;;  %v1464_v62 = vpop.xlane.xlu1 %1463 }
 0x672   : > { %2383 = vpow2.f32 %v1548_v55  ;;  %v1500_v3 = vsub.f32 %v2948_v16, %v1464_v62  ;;  %v1501_v6 = vsub.f32 %v2950_v17, %v1464_v62  ;;  %v1594_v57 = vadd.f32 %v2374_v59, %v2372_v10 }
 0x673   : > { %2385 = vpow2.f32 %v1550_v11 }
 0x674   : > { %v2376_v13 = vpop.eup %2375  ;;  %v1552_v14 = vmul.f32 1.442695, %v1500_v3  ;;  %v1554_v9 = vmul.f32 1.442695, %v1501_v6 }
 0x675   : > { %v2378_v58 = vpop.eup %2377  ;;  %1595 = vadd.xlane.f32.xlu1 %v1594_v57  ;;  %v1467_v12 = vpop.xlane.xlu1 %1466  ;;  %v2253_v15 = vpack.c.bf16 %v2376_v13, %v2372_v10 }
 0x676   : > { %2387 = vpow2.f32 %v1552_v14  ;;  %v1502_v18 = vsub.f32 %v2954_v19, %v1467_v12  ;;  %v1503_v21 = vsub.f32 %v2956_v20, %v1467_v12  ;;  %v2251_v60 = vpack.c.bf16 %v2378_v58, %v2374_v59 }
 0x677   : > { %2389 = vpow2.f32 %v1554_v9  ;;  %v1597_v24 = vadd.f32 %v2378_v58, %v2376_v13  ;;  %v1657_v58 = vld [vmem:[%s3018_s12] sm:$0xff] }
 0x678   : > { %v2380_v16 = vpop.eup %2379  ;;  %v1556_v61 = vmul.f32 1.442695, %v1502_v18  ;;  %v1558_v17 = vmul.f32 1.442695, %v1503_v21  ;;  %2252 = vmatprep.subr.bf16.mxu1 %v2251_v60  ;;  %v1658_v21 = vld [vmem:[%s3018_s12 + $0x8] sm:$0xff] }
 0x679   : > { %v2382_v27 = vpop.eup %2381  ;;  %1598 = vadd.xlane.f32.xlu1 %v1597_v24  ;;  %2254 = vmatpush1.bf16.msra.mxu1 %v2253_v15  ;;  %v1470_v2 = vpop.xlane.xlu1 %1469 }
 0x67a   : > { %2391 = vpow2.f32 %v1556_v61  ;;  %v1504_v31 = vsub.f32 %v2960_v22, %v1470_v2  ;;  %v1505_v32 = vsub.f32 %v2962_v23, %v1470_v2  ;;  %v1600_v33 = vadd.f32 %v2382_v27, %v2380_v16  ;;  %v1659_v61 = vld [vmem:[%s3018_s12 + $0x10] sm:$0xff] }
 0x67b   : > { %2393 = vpow2.f32 %v1558_v17 }
 0x67c   : > { %v2384_v19 = vpop.eup %2383  ;;  %v1560_v20 = vmul.f32 1.442695, %v1504_v31  ;;  %v1562_v63 = vmul.f32 1.442695, %v1505_v32  ;;  %v1660_v31 = vld [vmem:[%s3018_s12 + $0x18] sm:$0xff] }
 0x67d   : > { %v2386_v1 = vpop.eup %2385  ;;  %1601 = vadd.xlane.f32.xlu1 %v1600_v33  ;;  %v1473_v34 = vpop.xlane.xlu1 %1472  ;;  %v2257_v35 = vpack.c.bf16 %v2384_v19, %v2380_v16 }
 0x67e   : > { %2395 = vpow2.f32 %v1560_v20  ;;  %v1506_v36 = vsub.f32 %v2966_v25, %v1473_v34  ;;  %v1507_v37 = vsub.f32 %v2968_v26, %v1473_v34  ;;  %v2255_v38 = vpack.c.bf16 %v2386_v1, %v2382_v27  ;;  %v1661_v20 = vld [vmem:[%s3018_s12 + $0x20] sm:$0xff] }
 0x67f   : > { %2397 = vpow2.f32 %v1562_v63  ;;  %v1603_v39 = vadd.f32 %v2386_v1, %v2384_v19 }
 0x680   : > { %v2388_v22 = vpop.eup %2387  ;;  %v1564_v40 = vmul.f32 1.442695, %v1506_v36  ;;  %v1566_v23 = vmul.f32 1.442695, %v1507_v37  ;;  %2256 = vmatprep.subr.bf16.mxu1 %v2255_v38 }
 0x681   : > { %v2390_v41 = vpop.eup %2389  ;;  %1604 = vadd.xlane.f32.xlu1 %v1603_v39  ;;  %2258 = vmatpush1.bf16.msra.mxu1 %v2257_v35  ;;  %v1476_v4 = vpop.xlane.xlu1 %1475  ;;  %v1662_v35 = vld [vmem:[%s3018_s12 + $0x28] sm:$0xff]  ;;  %v1663_v39 = vld [vmem:[%s3018_s12 + $0x30] sm:$0xff] }
 0x682   : > { %2399 = vpow2.f32 %v1564_v40  ;;  %v1508_v42 = vsub.f32 %v2972_v28, %v1476_v4  ;;  %v1509_v5 = vsub.f32 %v2974_v29, %v1476_v4  ;;  %v1606_v43 = vadd.f32 %v2390_v41, %v2388_v22 }
 0x683   : > { %2401 = vpow2.f32 %v1566_v23 }
 0x684   : > { %v2392_v25 = vpop.eup %2391  ;;  %v1568_v26 = vmul.f32 1.442695, %v1508_v42  ;;  %v1570_v44 = vmul.f32 1.442695, %v1509_v5 }
 0x685   : > { %v2394_v45 = vpop.eup %2393  ;;  %1607 = vadd.xlane.f32.xlu1 %v1606_v43  ;;  %v1479_v46 = vpop.xlane.xlu1 %1478  ;;  %v2261_v47 = vpack.c.bf16 %v2392_v25, %v2388_v22  ;;  %v1665_v43 = vld [vmem:[%s3018_s12 + $0x40] sm:$0xff] }
 0x686   : > { %2403 = vpow2.f32 %v1568_v26  ;;  %v1510_v7 = vsub.f32 %v2978_v30, %v1479_v46  ;;  %v1511_v8 = vsub.f32 %v2980_v0, %v1479_v46  ;;  %v2259_v48 = vpack.c.bf16 %v2394_v45, %v2390_v41  ;;  %v1664_v41 = vld [vmem:[%s3018_s12 + $0x38] sm:$0xff] }
 0x687   : > { %2405 = vpow2.f32 %v1570_v44  ;;  %v1609_v49 = vadd.f32 %v2394_v45, %v2392_v25  ;;  %v1666_v45 = vld [vmem:[%s3018_s12 + $0x48] sm:$0xff] }
 0x688   : > { %v2396_v28 = vpop.eup %2395  ;;  %v1572_v50 = vmul.f32 1.442695, %v1510_v7  ;;  %v1574_v29 = vmul.f32 1.442695, %v1511_v8  ;;  %2260 = vmatprep.subr.bf16.mxu1 %v2259_v48  ;;  %v1667_v8 = vld [vmem:[%s3018_s12 + $0x50] sm:$0xff] }
 0x689   : > { %v2398_v51 = vpop.eup %2397  ;;  %1610 = vadd.xlane.f32.xlu1 %v1609_v49  ;;  %2262 = vmatpush1.bf16.msra.mxu1 %v2261_v47 }
 0x68a   : > { %2407 = vpow2.f32 %v1572_v50  ;;  %v1612_v52 = vadd.f32 %v2398_v51, %v2396_v28  ;;  %v1668_v50 = vld [vmem:[%s3018_s12 + $0x58] sm:$0xff] }
 0x68b   : > { %2409 = vpow2.f32 %v1574_v29 }
 0x68c   : > { %v2400_v53 = vpop.eup %2399 }
 0x68d   : > { %v2402_v56 = vpop.eup %2401  ;;  %1613 = vadd.xlane.f32.xlu1 %v1612_v52  ;;  %v2265_v54 = vpack.c.bf16 %v2400_v53, %v2396_v28 }
 0x68e   : > { %v1615_v30 = vadd.f32 %v2402_v56, %v2400_v53  ;;  %v2263_v10 = vpack.c.bf16 %v2402_v56, %v2398_v51  ;;  %v1669_v53 = vld [vmem:[%s3018_s12 + $0x60] sm:$0xff] }
 0x690   : > { %v2404_v0 = vpop.eup %2403  ;;  %1616 = vadd.xlane.f32.xlu0 %v1615_v30  ;;  %2264 = vmatprep.subr.bf16.mxu1 %v2263_v10  ;;  %v1670_v10 = vld [vmem:[%s3018_s12 + $0x68] sm:$0xff] }
 0x691   : > { %v2406_v55 = vpop.eup %2405  ;;  %2266 = vmatpush1.bf16.msra.mxu1 %v2265_v54 }
 0x692   : > { %v1618_v11 = vadd.f32 %v2406_v55, %v2404_v0 }
 0x694   : > { %v2408_v59 = vpop.eup %2407  ;;  %1619 = vadd.xlane.f32.xlu1 %v1618_v11  ;;  %v1671_v11 = vld [vmem:[%s3018_s12 + $0x70] sm:$0xff] }
 0x695   : > { %v2410_v62 = vpop.eup %2409  ;;  %v2269_v3 = vpack.c.bf16 %v2408_v59, %v2404_v0 }
 0x696   : > { %v1621_v6 = vadd.f32 %v2410_v62, %v2408_v59  ;;  %v2267_v57 = vpack.c.bf16 %v2410_v62, %v2406_v55 }
 0x698   : > { %1622 = vadd.xlane.f32.xlu0 %v1621_v6  ;;  %2268 = vmatprep.subr.bf16.mxu1 %v2267_v57 }
 0x699   : > { %2270 = vmatpush1.bf16.msra.mxu1 %v2269_v3  ;;  %v1672_v3 = vld [vmem:[%s3018_s12 + $0x78] sm:$0xff] }
 0x6e9   : > { %v1578_v13 = vpop.xlane.xlu1 %1577 }
 0x6ea   : > { %2411 = vrcp.f32 %v1578_v13 }
 0x6ee   : > { %v1581_v14 = vpop.xlane.xlu1 %1580 }
 0x6ef   : > { %2413 = vrcp.f32 %v1581_v14 }
 0x6f2   : > { %v1584_v9 = vpop.xlane.xlu1 %1583 }
 0x6f3   : > { %2415 = vrcp.f32 %v1584_v9  ;;  %v1689_v9 = vld [vmem:[#allocation3] sm:$0xff] }
 0x6f4   : > { %v2412_v12 = vpop.eup %2411 }
 0x6f5   : > { %v1673_v15 = vmul.f32 %v2412_v12, %v1657_v58 }
 0x6f6   : > { %v1587_v18 = vpop.xlane.xlu1 %1586 }
 0x6f7   : > { %2417 = vrcp.f32 %v1587_v18  ;;  %1690 = vxpose.xlu1.b32.start [1/16] (narrow) %v1673_v15, 8 }
 0x6f9   : > { %v2414_v60 = vpop.eup %2413 }
 0x6fa   : > { %v1590_v24 = vpop.xlane.xlu1 %1589  ;;  %v1674_v16 = vmul.f32 %v2414_v60, %v1658_v21 }
 0x6fb   : > { %2419 = vrcp.f32 %v1590_v24 }
 0x6fc   : > { %1691 = vxpose.xlu1.b32.cont [2/16] (narrow) %v1674_v16, 8 }
 0x6fd   : > { %v2416_v17 = vpop.eup %2415 }
 0x6fe   : > { %v1593_v27 = vpop.xlane.xlu1 %1592  ;;  %v1675_v2 = vmul.f32 %v2416_v17, %v1659_v61 }
 0x6ff   : > { %2421 = vrcp.f32 %v1593_v27 }
 0x700   : > { %1692 = vxpose.xlu1.b32.cont [3/16] (narrow) %v1675_v2, 8 }
 0x701   : > { %v2418_v32 = vpop.eup %2417 }
 0x702   : > { %v1596_v33 = vpop.xlane.xlu1 %1595  ;;  %v1676_v19 = vmul.f32 %v2418_v32, %v1660_v31 }
 0x703   : > { %2423 = vrcp.f32 %v1596_v33 }
 0x704   : > { %1693 = vxpose.xlu1.b32.cont [4/16] (narrow) %v1676_v19, 8 }
 0x705   : > { %v2420_v63 = vpop.eup %2419 }
 0x706   : > { %v1599_v1 = vpop.xlane.xlu1 %1598  ;;  %v1677_v34 = vmul.f32 %v2420_v63, %v1661_v20 }
 0x707   : > { %2425 = vrcp.f32 %v1599_v1 }
 0x708   : > { %1694 = vxpose.xlu1.b32.cont [5/16] (narrow) %v1677_v34, 8 }
 0x709   : > { %v2422_v36 = vpop.eup %2421 }
 0x70a   : > { %v1602_v37 = vpop.xlane.xlu1 %1601  ;;  %v1678_v38 = vmul.f32 %v2422_v36, %v1662_v35 }
 0x70b   : > { %2427 = vrcp.f32 %v1602_v37 }
 0x70c   : > { %1695 = vxpose.xlu1.b32.cont [6/16] (narrow) %v1678_v38, 8 }
 0x70d   : > { %v2424_v22 = vpop.eup %2423 }
 0x70e   : > { %v1605_v40 = vpop.xlane.xlu1 %1604  ;;  %v1679_v23 = vmul.f32 %v2424_v22, %v1663_v39 }
 0x70f   : > { %2429 = vrcp.f32 %v1605_v40 }
 0x710   : > { %1696 = vxpose.xlu1.b32.cont [7/16] (narrow) %v1679_v23, 8 }
 0x711   : > { %v2426_v4 = vpop.eup %2425 }
 0x712   : > { %v1608_v42 = vpop.xlane.xlu1 %1607  ;;  %v1680_v5 = vmul.f32 %v2426_v4, %v1664_v41 }
 0x713   : > { %2431 = vrcp.f32 %v1608_v42 }
 0x714   : > { %1697 = vxpose.xlu1.b32.cont [8/16] (narrow) %v1680_v5, 8 }
 0x715   : > { %v2428_v25 = vpop.eup %2427 }
 0x716   : > { %v1611_v26 = vpop.xlane.xlu1 %1610  ;;  %v1681_v44 = vmul.f32 %v2428_v25, %v1665_v43 }
 0x717   : > { %2433 = vrcp.f32 %v1611_v26 }
 0x718   : > { %1698 = vxpose.xlu1.b32.cont [9/16] (narrow) %v1681_v44, 8 }
 0x719   : > { %v2430_v46 = vpop.eup %2429 }
 0x71a   : > { %v1614_v47 = vpop.xlane.xlu1 %1613  ;;  %v1682_v7 = vmul.f32 %v2430_v46, %v1666_v45 }
 0x71b   : > { %2435 = vrcp.f32 %v1614_v47 }
 0x71c   : > { %1699 = vxpose.xlu1.b32.cont [10/16] (narrow) %v1682_v7, 8 }
 0x71d   : > { %v2432_v48 = vpop.eup %2431  ;;  %v1617_v49 = vpop.xlane.xlu0 %1616 }
 0x71e   : > { %2437 = vrcp.f32 %v1617_v49  ;;  %v1683_v28 = vmul.f32 %v2432_v48, %v1667_v8 }
 0x720   : > { %1700 = vxpose.xlu1.b32.cont [11/16] (narrow) %v1683_v28, 8 }
 0x721   : > { %v2434_v29 = vpop.eup %2433  ;;  %v1620_v51 = vpop.xlane.xlu1 %1619 }
 0x722   : > { %2439 = vrcp.f32 %v1620_v51  ;;  %v1684_v52 = vmul.f32 %v2434_v29, %v1668_v50 }
 0x724   : > { %1701 = vxpose.xlu1.b32.cont [12/16] (narrow) %v1684_v52, 8 }
 0x725   : > { %v2436_v56 = vpop.eup %2435  ;;  %v1623_v54 = vpop.xlane.xlu0 %1622 }
 0x726   : > { %2441 = vrcp.f32 %v1623_v54  ;;  %v1685_v30 = vmul.f32 %v2436_v56, %v1669_v53 }
 0x728   : > { %v2438_v0 = vpop.eup %2437  ;;  %1702 = vxpose.xlu1.b32.cont [13/16] (narrow) %v1685_v30, 8 }
 0x729   : > { %v1686_v55 = vmul.f32 %v2438_v0, %v1670_v10 }
 0x72c   : > { %v2440_v59 = vpop.eup %2439  ;;  %1703 = vxpose.xlu1.b32.cont [14/16] (narrow) %v1686_v55, 8 }
 0x72d   : > { %v1687_v62 = vmul.f32 %v2440_v59, %v1671_v11 }
 0x730   : > { %v2442_v6 = vpop.eup %2441  ;;  %1704 = vxpose.xlu1.b32.cont [15/16] (narrow) %v1687_v62, 8 }
 0x731   : > { %v1688_v57 = vmul.f32 %v2442_v6, %v1672_v3 }
 0x734   : > { %1705 = vxpose.xlu1.b32.end [16/16] (narrow) %v1688_v57, 8 }
 0x778   : > { %v1706_v13 = vpop.trf.xlu1 }
 0x779   : > { %1787 = vmatmul.mubr.f32.vlgmr.msra.gmra.mrb[0].mxu1 %v1706_v13 }
 0x84c   : > { %v1788_v14 = vpop.f32.mrb[0].mxu1  ;;  %1802 = sbr.rel (%p1991_p0) target bundleno = 2139 (0x85b), region = 44 }
 0x84d   : > { %v1790_v58 = vpop.f32.mrb[1].mxu1 }
 0x84e   : > { %v1795_v12 = vcombine.low %v1788_v14, %v1790_v58 }
 0x850   : > { %v1797_v15 = vadd.f32 %v1795_v12, %v1689_v9 }
 0x852   : > { %1798 = vst [vmem:[#allocation3] sm:$0xff] %v1797_v15 }
 0x859   : > { %v1803_v18 = vld [vmem:[#allocation3] sm:$0xff] }
 0x85a   : > { %1804 = vst [vmem:[%s202_s13] sm:$0xff] %v1803_v18 }
 0x85b PF: > { %s1998_s24 = sshll.u32 %s2525_s19, 7  ;;  %s1820_s9 = sshll.u32 %s202_s13, 4  ;;  %s1821_s9 = int_to_ptr.vmem [resolvable:$true] %s1820_s9 }
 0x85c   : > { %s3043_s8 = scalar_lea.hbm %s3098_s4, %s1998_s24  ;;  %s3102_s18 = sand.u32 1, %s2513_s16  }
 0x85d   : > { %s1806_s10 = scalar_lea.sflag [#allocation5], %s3102_s18  ;;  %s2443_s11 = scalar_lea.vmem %s1821_s9, 128 }
 0x85e   : > { %p2444_p1 = scmp.ne.s32.totalorder %s1821_s9, %s2443_s11  ;;  %s2542_s6 = smov [#allocation4]  }
 0x85f   : > { %s2447_s14 = sshll.u32 %s2542_s6, 4  ;;  %s2448_s14 = int_to_ptr.vmem [resolvable:$false] %s2447_s14 }
 0x860   : > { %p2445_p2 = pnand %p2444_p1, %p2617_p3  ;;  %s2449_s23 = scalar_lea.vmem %s2448_s14, 256 }
 0x861   : > { %p2450_p5 = scmp.lt.s32.totalorder %s1821_s9, %s2448_s14  ;;  %p2451_p6 = scmp.lt.s32.totalorder %s2449_s23, %s2443_s11 }
 0x862   : > { %p2446_p4 = pneg %p2445_p2 }
 0x863   : > { %p2452_p7 = por %p2451_p6, %p2450_p5 }
 0x865   : > { %p2453_p8 = pnand %p2452_p7, %p2446_p4 }
 0x867   : > { %2456 = shalt.err (!%p2453_p8)
}
 0x868   : > { %s2457_s19 = scalar_lea.hbm %s3043_s8, 128  ;;  %s2461_s12 = scalar_lea.hbm %s3098_s4, 256 }
 0x869   : > { %p2458_p10 = scmp.ne.s32.totalorder %s3043_s8, %s2457_s19  ;;  %p2462_p13 = scmp.lt.u32.totalorder %s3043_s8, %s3098_s4 }
 0x86a   : > { %p2463_p0 = scmp.lt.u32.totalorder %s2461_s12, %s2457_s19  ;;  %p2465_p2 = scmp.lt.u32.totalorder %s2457_s19, %s3043_s8 }
 0x86b   : > { %p2459_p11 = pnand %p2458_p10, %p2617_p3 }
 0x86c   : > { %p2464_p1 = por %p2463_p0, %p2462_p13 }
 0x86d   : > { %p2460_p12 = pneg %p2459_p11 }
 0x86e   : > { %p2466_p4 = por %p2465_p2, %p2464_p1 }
 0x870   : > { %p2467_p5 = pnand %p2466_p4, %p2460_p12 }
 0x872   : > { %2470 = shalt.err (!%p2467_p5)
}
 0x873   : > { %2271 = dma.vmem_to_hbm [thread:$0]  (%p2617_p3), %s1821_s9, 128, %s3043_s8, %s1806_s10  }
 0x874 PF: > { %p2277_p6 = scmp.ge.s32.totalorder %s2537_s22, 2  ;;  %s1832_s30 = sand.u32 1, %s2509_s15  }
 0x875   : > { %s1833_s18 = scalar_lea.sflag [#allocation5], %s1832_s30 }
 0x876   : > { %p2274_p7 = pnand %p2277_p6, %p2627_p9 }
 0x878   : > { %2504 = dma.done.wait (!%p2274_p7), %s1833_s18, 128  }
 0x879   : > { %2506 = vsyncadd (!%p2274_p7), %s1833_s18, 4294967168  ;;  %s17_s22 = sadd.s32 1, %s2537_s22   ;;  %s3103_s15 = smov %s2513_s16 }
 0x87a   : > { %p14_p8 = scmp.ge.s32.totalorder %s17_s22, 6   ;;  %s3104_s16 = smov %s2517_s17 }
 0x87b   : > { %s3105_s17 = smov %s2635_s5  ;;  %s3106_s18 = smov %s2529_s20 }
 0x87c   : > { %s3107_s19 = smov %s2533_s21  ;;  %s3108_s20 = smov %s3111_s25 }
 0x87d   : > { %s3109_s21 = smov %s3115_s26  ;;  %16 = sbr.rel (!%p14_p8) target bundleno = 5 (0x5), region = 81 }
 0x884   :  { %1838 = vsyncpa [#allocation5], 1 }
 0x885   :  { %1840 = vsyncpa [#allocation5 + $0x1], 1 }

</bundles_post_ra>
